<compile_context>
chip_gen: v7x
topology: tpu7x:2x2x1
jax: 0.10.0
libtpu: 0.0.40
codegen_flags: <defaults>
</compile_context>

<pallas_src>
import functools
import math

import jax
import jax.numpy as jnp
from jax.experimental import pallas as pl
from jax.experimental.pallas import tpu as pltpu

_LANE = 128                       # TPU lane width: channels live on the last axis
_BN_EPS = 1e-5
_VMEM_HEADROOM = 0.70             # fraction of physical VMEM we allow resident


def _round_up(x, m):
    return (x + m - 1) // m * m


def _vmem_capacity_bytes():
    """Generation-aware physical VMEM size (64 MiB v7x, 128 MiB v5e/v6e)."""
    try:
        cap = int(getattr(pltpu.get_tpu_info(), "vmem_capacity_bytes", 0))
        if cap > 0:
            return cap
    except Exception:
        pass
    return 64 * 1024 * 1024       # conservative (v7x-sized) fallback


def _vmem_budget_bytes():
    return int(_vmem_capacity_bytes() * _VMEM_HEADROOM)


def _assert_fits_vmem(need_bytes, budget_bytes, what):
    if need_bytes > budget_bytes:
        # TODO(synk): add the L-tiled grid path (halo index_map + cross-tile
        # sum/sum-of-squares BN accumulation) for shapes that do not fit
        # fully VMEM-resident.
        raise NotImplementedError(
            f"fused ResNet1D {what} kernel wants ~{need_bytes} bytes resident in "
            f"VMEM (budget {budget_bytes}); add the tiled path for shapes this large")


# ---------------------------------------------------------------------------
# In-kernel helpers (operate on VMEM refs / f32 values, 2-D (N*L, C) layout)
# ---------------------------------------------------------------------------
def _zero_col_halo(col_ref, *, n, l, k, pad, c):
    """Zero only the conv halo rows of the (n*l, k*c) im2col buffer.

    The center rows of every tap band are fully overwritten by every fill, so
    this runs exactly once per pallas_call (not per block / per conv)."""
    zdt = col_ref.dtype
    for t in range(k):
        off = t - pad
        top = min(max(0, -off), l)          # unfilled rows at the top of a batch
        bot = min(max(0, off), l)           # unfilled rows at the bottom
        for b in range(n):
            if top:
                col_ref[b * l:b * l + top, t * c:(t + 1) * c] = jnp.zeros((top, c), zdt)
            if bot:
                col_ref[b * l + l - bot:b * l + l, t * c:(t + 1) * c] = jnp.zeros((bot, c), zdt)


def _fill_col(col_ref, src, *, n, l, k, pad, c):
    """Scatter the K shifted copies of the (n*l, c) activation into the
    (n*l, k*c) im2col buffer (column band t holds x[row + t - pad]).

    `src` may be a VMEM ref or an in-register value.  Halo rows are assumed to
    already be zero.  Static Python loops -> straight-line masked copies."""
    for t in range(k):
        off = t - pad
        rows = l - abs(off)
        if rows <= 0:
            continue
        d0 = max(0, -off)                   # first written row within a batch
        s0 = max(0, off)                    # first read row within a batch
        for b in range(n):
            v = src[b * l + s0:b * l + s0 + rows, :]
            col_ref[b * l + d0:b * l + d0 + rows, t * c:(t + 1) * c] = v.astype(col_ref.dtype)


def _conv_matmul(col_ref, w):
    """ONE MXU matmul per conv: (n*l, k*cin) @ (k*cin, cout), bf16 operands,
    f32 accumulation (K taps folded into the contraction depth)."""
    return jnp.dot(col_ref[...].astype(jnp.bfloat16), w,
                   preferred_element_type=jnp.float32)


def _batchnorm_train(h, gamma, beta, *, count, eps):
    """PyTorch training-mode BatchNorm1d: per-channel stats over the full
    (N, L) extent (= all rows of the flat (N*L, C) activation), biased
    variance, all math in f32.  rsqrt goes to the EUP slot."""
    inv_count = 1.0 / float(count)
    mean = jnp.sum(h, axis=0, keepdims=True) * inv_count
    d = h - mean
    var = jnp.sum(d * d, axis=0, keepdims=True) * inv_count
    return d * jax.lax.rsqrt(var + eps) * gamma + beta


# ---------------------------------------------------------------------------
# Kernel bodies
# ---------------------------------------------------------------------------
def _stem_kernel(x_ref, w_ref, g_ref, b_ref, o_ref, col_ref,
                 *, n, l, k, pad, c, eps):
    """Fused stem: relu(bn1(conv1(x)))."""
    # TODO(synk): Cin is tiny (4 -> padded 128), so most of this matmul is
    # zero padding; a packed-contraction / VPU formulation would avoid it.
    _zero_col_halo(col_ref, n=n, l=l, k=k, pad=pad, c=c)
    _fill_col(col_ref, x_ref, n=n, l=l, k=k, pad=pad, c=c)
    h = _conv_matmul(col_ref, w_ref[...])
    y = _batchnorm_train(h, g_ref[...], b_ref[...], count=n * l, eps=eps)
    o_ref[...] = jnp.maximum(y, 0.0)


def _blocks_kernel(x_ref, w1_ref, g1_ref, b1_ref, w2_ref, g2_ref, b2_ref,
                   o_ref, col_ref, *, n, l, k, pad, c, eps):
    """All residual blocks fused into one gridded call; grid step i runs block i:

        out = relu(bn2(conv2(relu(bn1(conv1(out))))) + out)

    The activation is carried across grid steps in the VMEM-resident output
    block `o_ref` (its block index never changes, so HBM writeback happens once
    at the end); per-block weights / BN params are streamed & double-buffered."""
    @pl.when(pl.program_id(0) == 0)
    def _():
        o_ref[...] = x_ref[...]                       # activation carry init
        _zero_col_halo(col_ref, n=n, l=l, k=k, pad=pad, c=c)

    # conv1 -> bn1 -> relu   (reads the block input from the resident carry)
    _fill_col(col_ref, o_ref, n=n, l=l, k=k, pad=pad, c=c)
    h = _conv_matmul(col_ref, w1_ref[0])
    y = _batchnorm_train(h, g1_ref[0], b1_ref[0], count=n * l, eps=eps)
    y = jnp.maximum(y, 0.0)

    # conv2 -> bn2
    _fill_col(col_ref, y, n=n, l=l, k=k, pad=pad, c=c)
    h = _conv_matmul(col_ref, w2_ref[0])
    y = _batchnorm_train(h, g2_ref[0], b2_ref[0], count=n * l, eps=eps)

    # residual add against the still-resident block input, final ReLU, carry.
    o_ref[...] = jnp.maximum(y + o_ref[...], 0.0)


# ---------------------------------------------------------------------------
# pallas_call wrappers
# ---------------------------------------------------------------------------
_VMEM_SPEC = pl.BlockSpec(memory_space=pltpu.MemorySpace.VMEM)


def _stem_call(x, w, g, b, *, n, l, k, pad, cin_p, cp, eps):
    m = n * l
    budget = _vmem_budget_bytes()
    need = (4 * m * cin_p            # x
            + 2 * w.size             # bf16 weights
            + 4 * m * cp             # output
            + 4 * m * k * cin_p      # im2col scratch
            + 8 * cp)                # BN params
    _assert_fits_vmem(need, budget, "stem")
    kern = functools.partial(_stem_kernel, n=n, l=l, k=k, pad=pad, c=cin_p, eps=eps)
    return pl.pallas_call(
        kern,
        out_shape=jax.ShapeDtypeStruct((m, cp), jnp.float32),
        in_specs=[_VMEM_SPEC, _VMEM_SPEC, _VMEM_SPEC, _VMEM_SPEC],
        out_specs=_VMEM_SPEC,
        scratch_shapes=[pltpu.VMEM((m, k * cin_p), jnp.float32)],   # im2col buffer
        compiler_params=pltpu.CompilerParams(vmem_limit_bytes=budget),
    )(x, w, g, b)


def _blocks_call(x, w1s, g1s, b1s, w2s, g2s, b2s, *, n, l, k, pad, c, eps):
    m = n * l
    nb = w1s.shape[0]
    budget = _vmem_budget_bytes()
    need = (2 * 4 * m * c            # resident input + resident output/carry
            + 4 * m * k * c          # im2col scratch
            + 2 * 2 * 2 * k * c * c  # 2 bf16 weights, double-buffered
            + 4 * 2 * 4 * c)         # 4 BN params, double-buffered
    _assert_fits_vmem(need, budget, "resblocks")
    kern = functools.partial(_blocks_kernel, n=n, l=l, k=k, pad=pad, c=c, eps=eps)
    grid_spec = pltpu.PrefetchScalarGridSpec(
        num_scalar_prefetch=0,
        grid=(nb,),
        in_specs=[
            pl.BlockSpec((m, c), lambda i: (0, 0)),            # stem output, resident
            pl.BlockSpec((1, k * c, c), lambda i: (i, 0, 0)),  # conv1 weights (streamed)
            pl.BlockSpec((1, 1, c), lambda i: (i, 0, 0)),      # bn1 gamma
            pl.BlockSpec((1, 1, c), lambda i: (i, 0, 0)),      # bn1 beta
            pl.BlockSpec((1, k * c, c), lambda i: (i, 0, 0)),  # conv2 weights (streamed)
            pl.BlockSpec((1, 1, c), lambda i: (i, 0, 0)),      # bn2 gamma
            pl.BlockSpec((1, 1, c), lambda i: (i, 0, 0)),      # bn2 beta
        ],
        out_specs=pl.BlockSpec((m, c), lambda i: (0, 0)),      # activation carry
        scratch_shapes=[pltpu.VMEM((m, k * c), jnp.float32)],  # im2col buffer
    )
    return pl.pallas_call(
        kern,
        out_shape=jax.ShapeDtypeStruct((m, c), jnp.float32),
        grid_spec=grid_spec,
        compiler_params=pltpu.CompilerParams(
            dimension_semantics=("arbitrary",),                # sequential block chain
            vmem_limit_bytes=budget,
        ),
        # output reuses the stem output's HBM buffer (safe: single resident
        # block, input read only before step 0, output written only at the end).
        input_output_aliases={0: 0},
    )(x, w1s, g1s, b1s, w2s, g2s, b2s)


# ---------------------------------------------------------------------------
# Parameter preparation (PyTorch layouts -> kernel layouts)
# ---------------------------------------------------------------------------
def _prep_conv_weight(w_oik, cin_pad, cout_pad):
    """PyTorch Conv1d weight (Cout, Cin, K) -> (K*Cin_pad, Cout_pad) bf16,
    K taps folded into the contraction dimension, zero-padded channels."""
    cout, cin, k = w_oik.shape
    w = jnp.transpose(w_oik.astype(jnp.float32), (2, 1, 0))          # (K, Cin, Cout)
    w = jnp.pad(w, ((0, 0), (0, cin_pad - cin), (0, cout_pad - cout)))
    return w.reshape(k * cin_pad, cout_pad).astype(jnp.bfloat16)


def _prep_bn_param(p, c_pad):
    c = p.shape[0]
    return jnp.pad(p.astype(jnp.float32), (0, c_pad - c)).reshape(1, c_pad)


# ---------------------------------------------------------------------------
# Public forward
# ---------------------------------------------------------------------------
def resnet1d_forward(x_ncl, params, *, kernel_size=3, eps=_BN_EPS):
    """Forward pass of ResNet1D (deepab) with training-mode BatchNorm semantics
    (current-batch biased statistics; running stats are not used/updated).

    x_ncl  : (N, C_in, L)  PyTorch NCL layout.
    params : {"conv1_w": (planes, C_in, K), "bn1_gamma": (planes,), "bn1_beta": (planes,),
              "blocks": [{"conv1_w", "bn1_gamma", "bn1_beta",
                          "conv2_w", "bn2_gamma", "bn2_beta"}, ...]}
    returns: (N, planes, L)
    """
    n, cin, l = x_ncl.shape
    planes = params["conv1_w"].shape[0]
    if not (planes != 0 and planes & (planes - 1) == 0):
        raise ValueError("The initial number of planes must be a power of 2")
    if kernel_size % 2 != 1:
        raise NotImplementedError("only odd ('same'-padded) kernel sizes are supported")
    k = kernel_size
    pad = k // 2
    cin_p = _round_up(cin, _LANE)
    cp = _round_up(planes, _LANE)

    # NCL -> flat (N*L, C) exactly once at the network boundary; channels are
    # zero-padded to a multiple of 128 so lanes / MXU columns / stores are dense.
    x = jnp.transpose(x_ncl.astype(jnp.float32), (0, 2, 1))
    x = jnp.pad(x, ((0, 0), (0, 0), (0, cin_p - cin))).reshape(n * l, cin_p)

    h = _stem_call(
        x,
        _prep_conv_weight(params["conv1_w"], cin_p, cp),
        _prep_bn_param(params["bn1_gamma"], cp),
        _prep_bn_param(params["bn1_beta"], cp),
        n=n, l=l, k=k, pad=pad, cin_p=cin_p, cp=cp, eps=eps)

    blocks = params["blocks"]
    if blocks:
        w1s = jnp.stack([_prep_conv_weight(blk["conv1_w"], cp, cp) for blk in blocks])
        w2s = jnp.stack([_prep_conv_weight(blk["conv2_w"], cp, cp) for blk in blocks])
        g1s = jnp.stack([_prep_bn_param(blk["bn1_gamma"], cp) for blk in blocks])
        b1s = jnp.stack([_prep_bn_param(blk["bn1_beta"], cp) for blk in blocks])
        g2s = jnp.stack([_prep_bn_param(blk["bn2_gamma"], cp) for blk in blocks])
        b2s = jnp.stack([_prep_bn_param(blk["bn2_beta"], cp) for blk in blocks])
        h = _blocks_call(h, w1s, g1s, b1s, w2s, g2s, b2s,
                         n=n, l=l, k=k, pad=pad, c=cp, eps=eps)

    # flat (N*L, C) -> NCL once at the output boundary; strip channel padding.
    out = h.reshape(n, l, cp)[:, :, :planes]
    return jnp.transpose(out, (0, 2, 1))


# ---------------------------------------------------------------------------
# Self-contained smoke test
# ---------------------------------------------------------------------------
if __name__ == "__main__":
    N, IN_CH, L = 2, 4, 16
    PLANES, KSIZE, NUM_BLOCKS = 64, 3, 2

    key = jax.random.PRNGKey(0)
    key_iter = iter(jax.random.split(key, 64))

    def nk():
        return next(key_iter)

    def bn_params(c):
        return (1.0 + 0.05 * jax.random.normal(nk(), (c,), jnp.float32),
                0.05 * jax.random.normal(nk(), (c,), jnp.float32))

    x = jax.random.normal(nk(), (N, IN_CH, L), dtype=jnp.float32)

    g0, b0 = bn_params(PLANES)
    params = {
        "conv1_w": 0.2 * jax.random.normal(nk(), (PLANES, IN_CH, KSIZE), jnp.float32),
        "bn1_gamma": g0,
        "bn1_beta": b0,
        "blocks": [],
    }
    for _ in range(NUM_BLOCKS):
        g1, b1 = bn_params(PLANES)
        g2, b2 = bn_params(PLANES)
        params["blocks"].append({
            "conv1_w": 0.2 * jax.random.normal(nk(), (PLANES, PLANES, KSIZE), jnp.float32),
            "bn1_gamma": g1,
            "bn1_beta": b1,
            "conv2_w": 0.2 * jax.random.normal(nk(), (PLANES, PLANES, KSIZE), jnp.float32),
            "bn2_gamma": g2,
            "bn2_beta": b2,
        })

    fwd = jax.jit(functools.partial(resnet1d_forward, kernel_size=KSIZE, eps=_BN_EPS))
    out = jax.block_until_ready(fwd(x, params))

    assert out.shape == (N, PLANES, L), out.shape
    assert bool(jnp.all(jnp.isfinite(out))), "non-finite output"
    print("KERNEL_OK")
</pallas_src>

<mosaic_0001>
module attributes {stable_mosaic.version = 11 : i64} {
  func.func @_stem_kernel(%arg0: memref<32x128xf32, #tpu.memory_space<vmem>>, %arg1: memref<384x128xbf16, #tpu.memory_space<vmem>>, %arg2: memref<1x128xf32, #tpu.memory_space<vmem>>, %arg3: memref<1x128xf32, #tpu.memory_space<vmem>>, %arg4: memref<32x128xf32, #tpu.memory_space<vmem>>, %arg5: memref<32x384xf32, #tpu.memory_space<vmem>>) attributes {dimension_semantics = [], scalar_prefetch = 0 : i64, scratch_operands = 1 : i64, tpu.core_type = #tpu.core_type<tc>} {
    %cst = arith.constant 0.000000e+00 : f32
    %0 = vector.broadcast %cst : f32 to vector<1x128xf32>
    %c0 = arith.constant 0 : index
    %c0_0 = arith.constant 0 : index
    %1 = vector.load %arg5[%c0, %c0_0] : memref<32x384xf32, #tpu.memory_space<vmem>>, vector<1x128xf32>
    tpu.vector_store %arg5[%c0, %c0_0], %0 {strides = array<i32>} : memref<32x384xf32, #tpu.memory_space<vmem>>, vector<1x128xf32>,
    %cst_1 = arith.constant 0.000000e+00 : f32
    %2 = vector.broadcast %cst_1 : f32 to vector<1x128xf32>
    %c16 = arith.constant 16 : index
    %c0_2 = arith.constant 0 : index
    %3 = vector.load %arg5[%c16, %c0_2] : memref<32x384xf32, #tpu.memory_space<vmem>>, vector<1x128xf32>
    tpu.vector_store %arg5[%c16, %c0_2], %2 {strides = array<i32>} : memref<32x384xf32, #tpu.memory_space<vmem>>, vector<1x128xf32>,
    %cst_3 = arith.constant 0.000000e+00 : f32
    %4 = vector.broadcast %cst_3 : f32 to vector<1x128xf32>
    %c15 = arith.constant 15 : index
    %c256 = arith.constant 256 : index
    %5 = vector.load %arg5[%c15, %c256] : memref<32x384xf32, #tpu.memory_space<vmem>>, vector<1x128xf32>
    tpu.vector_store %arg5[%c15, %c256], %4 {strides = array<i32>} : memref<32x384xf32, #tpu.memory_space<vmem>>, vector<1x128xf32>,
    %cst_4 = arith.constant 0.000000e+00 : f32
    %6 = vector.broadcast %cst_4 : f32 to vector<1x128xf32>
    %c31 = arith.constant 31 : index
    %c256_5 = arith.constant 256 : index
    %7 = vector.load %arg5[%c31, %c256_5] : memref<32x384xf32, #tpu.memory_space<vmem>>, vector<1x128xf32>
    tpu.vector_store %arg5[%c31, %c256_5], %6 {strides = array<i32>} : memref<32x384xf32, #tpu.memory_space<vmem>>, vector<1x128xf32>,
    %c0_6 = arith.constant 0 : index
    %c0_7 = arith.constant 0 : index
    %8 = vector.load %arg0[%c0_6, %c0_7] : memref<32x128xf32, #tpu.memory_space<vmem>>, vector<15x128xf32>
    %c1 = arith.constant 1 : index
    %c0_8 = arith.constant 0 : index
    %9 = vector.load %arg5[%c1, %c0_8] : memref<32x384xf32, #tpu.memory_space<vmem>>, vector<15x128xf32>
    tpu.vector_store %arg5[%c1, %c0_8], %8 {strides = array<i32>} : memref<32x384xf32, #tpu.memory_space<vmem>>, vector<15x128xf32>,
    %c16_9 = arith.constant 16 : index
    %c0_10 = arith.constant 0 : index
    %10 = vector.load %arg0[%c16_9, %c0_10] : memref<32x128xf32, #tpu.memory_space<vmem>>, vector<15x128xf32>
    %c17 = arith.constant 17 : index
    %c0_11 = arith.constant 0 : index
    %11 = vector.load %arg5[%c17, %c0_11] : memref<32x384xf32, #tpu.memory_space<vmem>>, vector<15x128xf32>
    tpu.vector_store %arg5[%c17, %c0_11], %10 {strides = array<i32>} : memref<32x384xf32, #tpu.memory_space<vmem>>, vector<15x128xf32>,
    %c0_12 = arith.constant 0 : index
    %c0_13 = arith.constant 0 : index
    %12 = vector.load %arg0[%c0_12, %c0_13] : memref<32x128xf32, #tpu.memory_space<vmem>>, vector<16x128xf32>
    %c0_14 = arith.constant 0 : index
    %c128 = arith.constant 128 : index
    %13 = vector.load %arg5[%c0_14, %c128] : memref<32x384xf32, #tpu.memory_space<vmem>>, vector<16x128xf32>
    tpu.vector_store %arg5[%c0_14, %c128], %12 {strides = array<i32>} : memref<32x384xf32, #tpu.memory_space<vmem>>, vector<16x128xf32>,
    %c16_15 = arith.constant 16 : index
    %c0_16 = arith.constant 0 : index
    %14 = vector.load %arg0[%c16_15, %c0_16] : memref<32x128xf32, #tpu.memory_space<vmem>>, vector<16x128xf32>
    %c16_17 = arith.constant 16 : index
    %c128_18 = arith.constant 128 : index
    %15 = vector.load %arg5[%c16_17, %c128_18] : memref<32x384xf32, #tpu.memory_space<vmem>>, vector<16x128xf32>
    tpu.vector_store %arg5[%c16_17, %c128_18], %14 {strides = array<i32>} : memref<32x384xf32, #tpu.memory_space<vmem>>, vector<16x128xf32>,
    %c1_19 = arith.constant 1 : index
    %c0_20 = arith.constant 0 : index
    %16 = vector.load %arg0[%c1_19, %c0_20] : memref<32x128xf32, #tpu.memory_space<vmem>>, vector<15x128xf32>
    %c0_21 = arith.constant 0 : index
    %c256_22 = arith.constant 256 : index
    %17 = vector.load %arg5[%c0_21, %c256_22] : memref<32x384xf32, #tpu.memory_space<vmem>>, vector<15x128xf32>
    tpu.vector_store %arg5[%c0_21, %c256_22], %16 {strides = array<i32>} : memref<32x384xf32, #tpu.memory_space<vmem>>, vector<15x128xf32>,
    %c17_23 = arith.constant 17 : index
    %c0_24 = arith.constant 0 : index
    %18 = vector.load %arg0[%c17_23, %c0_24] : memref<32x128xf32, #tpu.memory_space<vmem>>, vector<15x128xf32>
    %c16_25 = arith.constant 16 : index
    %c256_26 = arith.constant 256 : index
    %19 = vector.load %arg5[%c16_25, %c256_26] : memref<32x384xf32, #tpu.memory_space<vmem>>, vector<15x128xf32>
    tpu.vector_store %arg5[%c16_25, %c256_26], %18 {strides = array<i32>} : memref<32x384xf32, #tpu.memory_space<vmem>>, vector<15x128xf32>,
    %c0_27 = arith.constant 0 : index
    %c0_28 = arith.constant 0 : index
    %20 = vector.load %arg1[%c0_27, %c0_28] : memref<384x128xbf16, #tpu.memory_space<vmem>>, vector<384x128xbf16>
    %c0_29 = arith.constant 0 : index
    %c0_30 = arith.constant 0 : index
    %21 = vector.load %arg5[%c0_29, %c0_30] : memref<32x384xf32, #tpu.memory_space<vmem>>, vector<32x384xf32>
    %22 = arith.truncf %21 : vector<32x384xf32> to vector<32x384xbf16>
    %cst_31 = arith.constant dense<0.000000e+00> : vector<32x128xf32>
    %23 = tpu.matmul %22, %20, %cst_31 {dimension_numbers = #tpu.dot_dimension_numbers<[1], [0], [0], [1], [0, 0, 1, 1], [], []>} : vector<32x384xbf16>, vector<384x128xbf16>, vector<32x128xf32> -> vector<32x128xf32>
    %c0_32 = arith.constant 0 : index
    %c0_33 = arith.constant 0 : index
    %24 = vector.load %arg2[%c0_32, %c0_33] : memref<1x128xf32, #tpu.memory_space<vmem>>, vector<1x128xf32>
    %c0_34 = arith.constant 0 : index
    %c0_35 = arith.constant 0 : index
    %25 = vector.load %arg3[%c0_34, %c0_35] : memref<1x128xf32, #tpu.memory_space<vmem>>, vector<1x128xf32>
    %cst_36 = arith.constant dense<0.000000e+00> : vector<128xf32>
    %26 = vector.multi_reduction <add>, %23, %cst_36 [0] : vector<32x128xf32> to vector<128xf32>
    %27 = vector.shape_cast %26 : vector<128xf32> to vector<1x128xf32>
    %cst_37 = arith.constant 3.125000e-02 : f32
    %28 = vector.broadcast %cst_37 : f32 to vector<1x128xf32>
    %29 = arith.mulf %27, %28 : vector<1x128xf32>
    %30 = vector.broadcast %29 : vector<1x128xf32> to vector<32x128xf32>
    %31 = arith.subf %23, %30 : vector<32x128xf32>
    %32 = arith.mulf %31, %31 : vector<32x128xf32>
    %cst_38 = arith.constant dense<0.000000e+00> : vector<128xf32>
    %33 = vector.multi_reduction <add>, %32, %cst_38 [0] : vector<32x128xf32> to vector<128xf32>
    %34 = vector.shape_cast %33 : vector<128xf32> to vector<1x128xf32>
    %cst_39 = arith.constant 3.125000e-02 : f32
    %35 = vector.broadcast %cst_39 : f32 to vector<1x128xf32>
    %36 = arith.mulf %34, %35 : vector<1x128xf32>
    %cst_40 = arith.constant 9.99999974E-6 : f32
    %37 = vector.broadcast %cst_40 : f32 to vector<1x128xf32>
    %38 = arith.addf %36, %37 : vector<1x128xf32>
    %39 = math.rsqrt %38 : vector<1x128xf32>
    %40 = vector.broadcast %39 : vector<1x128xf32> to vector<32x128xf32>
    %41 = arith.mulf %31, %40 : vector<32x128xf32>
    %42 = vector.broadcast %24 : vector<1x128xf32> to vector<32x128xf32>
    %43 = arith.mulf %41, %42 : vector<32x128xf32>
    %44 = vector.broadcast %25 : vector<1x128xf32> to vector<32x128xf32>
    %45 = arith.addf %43, %44 : vector<32x128xf32>
    %cst_41 = arith.constant 0.000000e+00 : f32
    %46 = vector.broadcast %cst_41 : f32 to vector<32x128xf32>
    %47 = arith.maximumf %45, %46 : vector<32x128xf32>
    %c0_42 = arith.constant 0 : index
    %c0_43 = arith.constant 0 : index
    %48 = vector.load %arg4[%c0_42, %c0_43] : memref<32x128xf32, #tpu.memory_space<vmem>>, vector<32x128xf32>
    tpu.vector_store %arg4[%c0_42, %c0_43], %47 {strides = array<i32>} : memref<32x128xf32, #tpu.memory_space<vmem>>, vector<32x128xf32>,
    return
  }
}

module attributes {stable_mosaic.version = 11 : i64} {
  func.func @_blocks_kernel(%arg0: i32, %arg1: memref<32x128xf32, #tpu.memory_space<vmem>>, %arg2: memref<1x384x128xbf16, #tpu.memory_space<vmem>>, %arg3: memref<1x1x128xf32, #tpu.memory_space<vmem>>, %arg4: memref<1x1x128xf32, #tpu.memory_space<vmem>>, %arg5: memref<1x384x128xbf16, #tpu.memory_space<vmem>>, %arg6: memref<1x1x128xf32, #tpu.memory_space<vmem>>, %arg7: memref<1x1x128xf32, #tpu.memory_space<vmem>>, %arg8: memref<32x128xf32, #tpu.memory_space<vmem>>, %arg9: memref<32x384xf32, #tpu.memory_space<vmem>>) attributes {dimension_semantics = [#tpu.dimension_semantics<arbitrary>], iteration_bounds = array<i64: 2>, scalar_prefetch = 0 : i64, scratch_operands = 1 : i64, tpu.core_type = #tpu.core_type<tc>, window_params = [{pipeline_mode = #tpu.pipeline_mode<synchronous>, transform_indices = @transform_0, window_bounds = array<i64: 32, 128>}, {transform_indices = @transform_1, window_bounds = array<i64: 1, 384, 128>}, {transform_indices = @transform_2, window_bounds = array<i64: 1, 1, 128>}, {transform_indices = @transform_3, window_bounds = array<i64: 1, 1, 128>}, {transform_indices = @transform_4, window_bounds = array<i64: 1, 384, 128>}, {transform_indices = @transform_5, window_bounds = array<i64: 1, 1, 128>}, {transform_indices = @transform_6, window_bounds = array<i64: 1, 1, 128>}, {pipeline_mode = #tpu.pipeline_mode<synchronous>, transform_indices = @transform_7, window_bounds = array<i64: 32, 128>}]} {
    %c0_i32 = arith.constant 0 : i32
    %0 = arith.cmpi eq, %arg0, %c0_i32 : i32
    %1 = arith.extui %0 : i1 to i32
    %c0_i32_0 = arith.constant 0 : i32
    %2 = arith.cmpi ne, %1, %c0_i32_0 : i32
    scf.if %2 {
      %c0_70 = arith.constant 0 : index
      %c0_71 = arith.constant 0 : index
      %92 = vector.load %arg1[%c0_70, %c0_71] : memref<32x128xf32, #tpu.memory_space<vmem>>, vector<32x128xf32>
      %c0_72 = arith.constant 0 : index
      %c0_73 = arith.constant 0 : index
      %93 = vector.load %arg8[%c0_72, %c0_73] : memref<32x128xf32, #tpu.memory_space<vmem>>, vector<32x128xf32>
      tpu.vector_store %arg8[%c0_72, %c0_73], %92 {strides = array<i32>} : memref<32x128xf32, #tpu.memory_space<vmem>>, vector<32x128xf32>,
      %cst_74 = arith.constant 0.000000e+00 : f32
      %94 = vector.broadcast %cst_74 : f32 to vector<1x128xf32>
      %c0_75 = arith.constant 0 : index
      %c0_76 = arith.constant 0 : index
      %95 = vector.load %arg9[%c0_75, %c0_76] : memref<32x384xf32, #tpu.memory_space<vmem>>, vector<1x128xf32>
      tpu.vector_store %arg9[%c0_75, %c0_76], %94 {strides = array<i32>} : memref<32x384xf32, #tpu.memory_space<vmem>>, vector<1x128xf32>,
      %cst_77 = arith.constant 0.000000e+00 : f32
      %96 = vector.broadcast %cst_77 : f32 to vector<1x128xf32>
      %c16_78 = arith.constant 16 : index
      %c0_79 = arith.constant 0 : index
      %97 = vector.load %arg9[%c16_78, %c0_79] : memref<32x384xf32, #tpu.memory_space<vmem>>, vector<1x128xf32>
      tpu.vector_store %arg9[%c16_78, %c0_79], %96 {strides = array<i32>} : memref<32x384xf32, #tpu.memory_space<vmem>>, vector<1x128xf32>,
      %cst_80 = arith.constant 0.000000e+00 : f32
      %98 = vector.broadcast %cst_80 : f32 to vector<1x128xf32>
      %c15 = arith.constant 15 : index
      %c256_81 = arith.constant 256 : index
      %99 = vector.load %arg9[%c15, %c256_81] : memref<32x384xf32, #tpu.memory_space<vmem>>, vector<1x128xf32>
      tpu.vector_store %arg9[%c15, %c256_81], %98 {strides = array<i32>} : memref<32x384xf32, #tpu.memory_space<vmem>>, vector<1x128xf32>,
      %cst_82 = arith.constant 0.000000e+00 : f32
      %100 = vector.broadcast %cst_82 : f32 to vector<1x128xf32>
      %c31 = arith.constant 31 : index
      %c256_83 = arith.constant 256 : index
      %101 = vector.load %arg9[%c31, %c256_83] : memref<32x384xf32, #tpu.memory_space<vmem>>, vector<1x128xf32>
      tpu.vector_store %arg9[%c31, %c256_83], %100 {strides = array<i32>} : memref<32x384xf32, #tpu.memory_space<vmem>>, vector<1x128xf32>,
    } else {
    }
    %c0 = arith.constant 0 : index
    %c0_1 = arith.constant 0 : index
    %3 = vector.load %arg8[%c0, %c0_1] : memref<32x128xf32, #tpu.memory_space<vmem>>, vector<15x128xf32>
    %c1 = arith.constant 1 : index
    %c0_2 = arith.constant 0 : index
    %4 = vector.load %arg9[%c1, %c0_2] : memref<32x384xf32, #tpu.memory_space<vmem>>, vector<15x128xf32>
    tpu.vector_store %arg9[%c1, %c0_2], %3 {strides = array<i32>} : memref<32x384xf32, #tpu.memory_space<vmem>>, vector<15x128xf32>,
    %c16 = arith.constant 16 : index
    %c0_3 = arith.constant 0 : index
    %5 = vector.load %arg8[%c16, %c0_3] : memref<32x128xf32, #tpu.memory_space<vmem>>, vector<15x128xf32>
    %c17 = arith.constant 17 : index
    %c0_4 = arith.constant 0 : index
    %6 = vector.load %arg9[%c17, %c0_4] : memref<32x384xf32, #tpu.memory_space<vmem>>, vector<15x128xf32>
    tpu.vector_store %arg9[%c17, %c0_4], %5 {strides = array<i32>} : memref<32x384xf32, #tpu.memory_space<vmem>>, vector<15x128xf32>,
    %c0_5 = arith.constant 0 : index
    %c0_6 = arith.constant 0 : index
    %7 = vector.load %arg8[%c0_5, %c0_6] : memref<32x128xf32, #tpu.memory_space<vmem>>, vector<16x128xf32>
    %c0_7 = arith.constant 0 : index
    %c128 = arith.constant 128 : index
    %8 = vector.load %arg9[%c0_7, %c128] : memref<32x384xf32, #tpu.memory_space<vmem>>, vector<16x128xf32>
    tpu.vector_store %arg9[%c0_7, %c128], %7 {strides = array<i32>} : memref<32x384xf32, #tpu.memory_space<vmem>>, vector<16x128xf32>,
    %c16_8 = arith.constant 16 : index
    %c0_9 = arith.constant 0 : index
    %9 = vector.load %arg8[%c16_8, %c0_9] : memref<32x128xf32, #tpu.memory_space<vmem>>, vector<16x128xf32>
    %c16_10 = arith.constant 16 : index
    %c128_11 = arith.constant 128 : index
    %10 = vector.load %arg9[%c16_10, %c128_11] : memref<32x384xf32, #tpu.memory_space<vmem>>, vector<16x128xf32>
    tpu.vector_store %arg9[%c16_10, %c128_11], %9 {strides = array<i32>} : memref<32x384xf32, #tpu.memory_space<vmem>>, vector<16x128xf32>,
    %c1_12 = arith.constant 1 : index
    %c0_13 = arith.constant 0 : index
    %11 = vector.load %arg8[%c1_12, %c0_13] : memref<32x128xf32, #tpu.memory_space<vmem>>, vector<15x128xf32>
    %c0_14 = arith.constant 0 : index
    %c256 = arith.constant 256 : index
    %12 = vector.load %arg9[%c0_14, %c256] : memref<32x384xf32, #tpu.memory_space<vmem>>, vector<15x128xf32>
    tpu.vector_store %arg9[%c0_14, %c256], %11 {strides = array<i32>} : memref<32x384xf32, #tpu.memory_space<vmem>>, vector<15x128xf32>,
    %c17_15 = arith.constant 17 : index
    %c0_16 = arith.constant 0 : index
    %13 = vector.load %arg8[%c17_15, %c0_16] : memref<32x128xf32, #tpu.memory_space<vmem>>, vector<15x128xf32>
    %c16_17 = arith.constant 16 : index
    %c256_18 = arith.constant 256 : index
    %14 = vector.load %arg9[%c16_17, %c256_18] : memref<32x384xf32, #tpu.memory_space<vmem>>, vector<15x128xf32>
    tpu.vector_store %arg9[%c16_17, %c256_18], %13 {strides = array<i32>} : memref<32x384xf32, #tpu.memory_space<vmem>>, vector<15x128xf32>,
    %c0_19 = arith.constant 0 : index
    %c0_20 = arith.constant 0 : index
    %c0_21 = arith.constant 0 : index
    %15 = vector.load %arg2[%c0_19, %c0_20, %c0_21] : memref<1x384x128xbf16, #tpu.memory_space<vmem>>, vector<1x384x128xbf16>
    %16 = vector.shape_cast %15 : vector<1x384x128xbf16> to vector<384x128xbf16>
    %c0_22 = arith.constant 0 : index
    %c0_23 = arith.constant 0 : index
    %17 = vector.load %arg9[%c0_22, %c0_23] : memref<32x384xf32, #tpu.memory_space<vmem>>, vector<32x384xf32>
    %18 = arith.truncf %17 : vector<32x384xf32> to vector<32x384xbf16>
    %cst = arith.constant dense<0.000000e+00> : vector<32x128xf32>
    %19 = tpu.matmul %18, %16, %cst {dimension_numbers = #tpu.dot_dimension_numbers<[1], [0], [0], [1], [0, 0, 1, 1], [], []>} : vector<32x384xbf16>, vector<384x128xbf16>, vector<32x128xf32> -> vector<32x128xf32>
    %c0_24 = arith.constant 0 : index
    %c0_25 = arith.constant 0 : index
    %c0_26 = arith.constant 0 : index
    %20 = vector.load %arg3[%c0_24, %c0_25, %c0_26] : memref<1x1x128xf32, #tpu.memory_space<vmem>>, vector<1x1x128xf32>
    %21 = vector.shape_cast %20 : vector<1x1x128xf32> to vector<1x128xf32>
    %c0_27 = arith.constant 0 : index
    %c0_28 = arith.constant 0 : index
    %c0_29 = arith.constant 0 : index
    %22 = vector.load %arg4[%c0_27, %c0_28, %c0_29] : memref<1x1x128xf32, #tpu.memory_space<vmem>>, vector<1x1x128xf32>
    %23 = vector.shape_cast %22 : vector<1x1x128xf32> to vector<1x128xf32>
    %cst_30 = arith.constant dense<0.000000e+00> : vector<128xf32>
    %24 = vector.multi_reduction <add>, %19, %cst_30 [0] : vector<32x128xf32> to vector<128xf32>
    %25 = vector.shape_cast %24 : vector<128xf32> to vector<1x128xf32>
    %cst_31 = arith.constant 3.125000e-02 : f32
    %26 = vector.broadcast %cst_31 : f32 to vector<1x128xf32>
    %27 = arith.mulf %25, %26 : vector<1x128xf32>
    %28 = vector.broadcast %27 : vector<1x128xf32> to vector<32x128xf32>
    %29 = arith.subf %19, %28 : vector<32x128xf32>
    %30 = arith.mulf %29, %29 : vector<32x128xf32>
    %cst_32 = arith.constant dense<0.000000e+00> : vector<128xf32>
    %31 = vector.multi_reduction <add>, %30, %cst_32 [0] : vector<32x128xf32> to vector<128xf32>
    %32 = vector.shape_cast %31 : vector<128xf32> to vector<1x128xf32>
    %cst_33 = arith.constant 3.125000e-02 : f32
    %33 = vector.broadcast %cst_33 : f32 to vector<1x128xf32>
    %34 = arith.mulf %32, %33 : vector<1x128xf32>
    %cst_34 = arith.constant 9.99999974E-6 : f32
    %35 = vector.broadcast %cst_34 : f32 to vector<1x128xf32>
    %36 = arith.addf %34, %35 : vector<1x128xf32>
    %37 = math.rsqrt %36 : vector<1x128xf32>
    %38 = vector.broadcast %37 : vector<1x128xf32> to vector<32x128xf32>
    %39 = arith.mulf %29, %38 : vector<32x128xf32>
    %40 = vector.broadcast %21 : vector<1x128xf32> to vector<32x128xf32>
    %41 = arith.mulf %39, %40 : vector<32x128xf32>
    %42 = vector.broadcast %23 : vector<1x128xf32> to vector<32x128xf32>
    %43 = arith.addf %41, %42 : vector<32x128xf32>
    %cst_35 = arith.constant 0.000000e+00 : f32
    %44 = vector.broadcast %cst_35 : f32 to vector<32x128xf32>
    %45 = arith.maximumf %43, %44 : vector<32x128xf32>
    %46 = vector.extract_strided_slice %45 {offsets = [0, 0], sizes = [15, 128], strides = [1, 1]} : vector<32x128xf32> to vector<15x128xf32>
    %c1_36 = arith.constant 1 : index
    %c0_37 = arith.constant 0 : index
    %47 = vector.load %arg9[%c1_36, %c0_37] : memref<32x384xf32, #tpu.memory_space<vmem>>, vector<15x128xf32>
    tpu.vector_store %arg9[%c1_36, %c0_37], %46 {strides = array<i32>} : memref<32x384xf32, #tpu.memory_space<vmem>>, vector<15x128xf32>,
    %48 = vector.extract_strided_slice %45 {offsets = [16, 0], sizes = [15, 128], strides = [1, 1]} : vector<32x128xf32> to vector<15x128xf32>
    %c17_38 = arith.constant 17 : index
    %c0_39 = arith.constant 0 : index
    %49 = vector.load %arg9[%c17_38, %c0_39] : memref<32x384xf32, #tpu.memory_space<vmem>>, vector<15x128xf32>
    tpu.vector_store %arg9[%c17_38, %c0_39], %48 {strides = array<i32>} : memref<32x384xf32, #tpu.memory_space<vmem>>, vector<15x128xf32>,
    %50 = vector.extract_strided_slice %45 {offsets = [0, 0], sizes = [16, 128], strides = [1, 1]} : vector<32x128xf32> to vector<16x128xf32>
    %c0_40 = arith.constant 0 : index
    %c128_41 = arith.constant 128 : index
    %51 = vector.load %arg9[%c0_40, %c128_41] : memref<32x384xf32, #tpu.memory_space<vmem>>, vector<16x128xf32>
    tpu.vector_store %arg9[%c0_40, %c128_41], %50 {strides = array<i32>} : memref<32x384xf32, #tpu.memory_space<vmem>>, vector<16x128xf32>,
    %52 = vector.extract_strided_slice %45 {offsets = [16, 0], sizes = [16, 128], strides = [1, 1]} : vector<32x128xf32> to vector<16x128xf32>
    %c16_42 = arith.constant 16 : index
    %c128_43 = arith.constant 128 : index
    %53 = vector.load %arg9[%c16_42, %c128_43] : memref<32x384xf32, #tpu.memory_space<vmem>>, vector<16x128xf32>
    tpu.vector_store %arg9[%c16_42, %c128_43], %52 {strides = array<i32>} : memref<32x384xf32, #tpu.memory_space<vmem>>, vector<16x128xf32>,
    %54 = vector.extract_strided_slice %45 {offsets = [1, 0], sizes = [15, 128], strides = [1, 1]} : vector<32x128xf32> to vector<15x128xf32>
    %c0_44 = arith.constant 0 : index
    %c256_45 = arith.constant 256 : index
    %55 = vector.load %arg9[%c0_44, %c256_45] : memref<32x384xf32, #tpu.memory_space<vmem>>, vector<15x128xf32>
    tpu.vector_store %arg9[%c0_44, %c256_45], %54 {strides = array<i32>} : memref<32x384xf32, #tpu.memory_space<vmem>>, vector<15x128xf32>,
    %56 = vector.extract_strided_slice %45 {offsets = [17, 0], sizes = [15, 128], strides = [1, 1]} : vector<32x128xf32> to vector<15x128xf32>
    %c16_46 = arith.constant 16 : index
    %c256_47 = arith.constant 256 : index
    %57 = vector.load %arg9[%c16_46, %c256_47] : memref<32x384xf32, #tpu.memory_space<vmem>>, vector<15x128xf32>
    tpu.vector_store %arg9[%c16_46, %c256_47], %56 {strides = array<i32>} : memref<32x384xf32, #tpu.memory_space<vmem>>, vector<15x128xf32>,
    %c0_48 = arith.constant 0 : index
    %c0_49 = arith.constant 0 : index
    %c0_50 = arith.constant 0 : index
    %58 = vector.load %arg5[%c0_48, %c0_49, %c0_50] : memref<1x384x128xbf16, #tpu.memory_space<vmem>>, vector<1x384x128xbf16>
    %59 = vector.shape_cast %58 : vector<1x384x128xbf16> to vector<384x128xbf16>
    %c0_51 = arith.constant 0 : index
    %c0_52 = arith.constant 0 : index
    %60 = vector.load %arg9[%c0_51, %c0_52] : memref<32x384xf32, #tpu.memory_space<vmem>>, vector<32x384xf32>
    %61 = arith.truncf %60 : vector<32x384xf32> to vector<32x384xbf16>
    %cst_53 = arith.constant dense<0.000000e+00> : vector<32x128xf32>
    %62 = tpu.matmul %61, %59, %cst_53 {dimension_numbers = #tpu.dot_dimension_numbers<[1], [0], [0], [1], [0, 0, 1, 1], [], []>} : vector<32x384xbf16>, vector<384x128xbf16>, vector<32x128xf32> -> vector<32x128xf32>
    %c0_54 = arith.constant 0 : index
    %c0_55 = arith.constant 0 : index
    %c0_56 = arith.constant 0 : index
    %63 = vector.load %arg6[%c0_54, %c0_55, %c0_56] : memref<1x1x128xf32, #tpu.memory_space<vmem>>, vector<1x1x128xf32>
    %64 = vector.shape_cast %63 : vector<1x1x128xf32> to vector<1x128xf32>
    %c0_57 = arith.constant 0 : index
    %c0_58 = arith.constant 0 : index
    %c0_59 = arith.constant 0 : index
    %65 = vector.load %arg7[%c0_57, %c0_58, %c0_59] : memref<1x1x128xf32, #tpu.memory_space<vmem>>, vector<1x1x128xf32>
    %66 = vector.shape_cast %65 : vector<1x1x128xf32> to vector<1x128xf32>
    %cst_60 = arith.constant dense<0.000000e+00> : vector<128xf32>
    %67 = vector.multi_reduction <add>, %62, %cst_60 [0] : vector<32x128xf32> to vector<128xf32>
    %68 = vector.shape_cast %67 : vector<128xf32> to vector<1x128xf32>
    %cst_61 = arith.constant 3.125000e-02 : f32
    %69 = vector.broadcast %cst_61 : f32 to vector<1x128xf32>
    %70 = arith.mulf %68, %69 : vector<1x128xf32>
    %71 = vector.broadcast %70 : vector<1x128xf32> to vector<32x128xf32>
    %72 = arith.subf %62, %71 : vector<32x128xf32>
    %73 = arith.mulf %72, %72 : vector<32x128xf32>
    %cst_62 = arith.constant dense<0.000000e+00> : vector<128xf32>
    %74 = vector.multi_reduction <add>, %73, %cst_62 [0] : vector<32x128xf32> to vector<128xf32>
    %75 = vector.shape_cast %74 : vector<128xf32> to vector<1x128xf32>
    %cst_63 = arith.constant 3.125000e-02 : f32
    %76 = vector.broadcast %cst_63 : f32 to vector<1x128xf32>
    %77 = arith.mulf %75, %76 : vector<1x128xf32>
    %cst_64 = arith.constant 9.99999974E-6 : f32
    %78 = vector.broadcast %cst_64 : f32 to vector<1x128xf32>
    %79 = arith.addf %77, %78 : vector<1x128xf32>
    %80 = math.rsqrt %79 : vector<1x128xf32>
    %81 = vector.broadcast %80 : vector<1x128xf32> to vector<32x128xf32>
    %82 = arith.mulf %72, %81 : vector<32x128xf32>
    %83 = vector.broadcast %64 : vector<1x128xf32> to vector<32x128xf32>
    %84 = arith.mulf %82, %83 : vector<32x128xf32>
    %85 = vector.broadcast %66 : vector<1x128xf32> to vector<32x128xf32>
    %86 = arith.addf %84, %85 : vector<32x128xf32>
    %c0_65 = arith.constant 0 : index
    %c0_66 = arith.constant 0 : index
    %87 = vector.load %arg8[%c0_65, %c0_66] : memref<32x128xf32, #tpu.memory_space<vmem>>, vector<32x128xf32>
    %88 = arith.addf %86, %87 : vector<32x128xf32>
    %cst_67 = arith.constant 0.000000e+00 : f32
    %89 = vector.broadcast %cst_67 : f32 to vector<32x128xf32>
    %90 = arith.maximumf %88, %89 : vector<32x128xf32>
    %c0_68 = arith.constant 0 : index
    %c0_69 = arith.constant 0 : index
    %91 = vector.load %arg8[%c0_68, %c0_69] : memref<32x128xf32, #tpu.memory_space<vmem>>, vector<32x128xf32>
    tpu.vector_store %arg8[%c0_68, %c0_69], %90 {strides = array<i32>} : memref<32x128xf32, #tpu.memory_space<vmem>>, vector<32x128xf32>,
    return
  }
  func.func @transform_0(%arg0: i32) -> (i32, i32) {
    %c0_i32 = arith.constant 0 : i32
    %c0_i32_0 = arith.constant 0 : i32
    %c0_i32_1 = arith.constant 0 : i32
    return %c0_i32, %c0_i32_0 : i32, i32
  }
  func.func @transform_1(%arg0: i32) -> (i32, i32, i32) {
    %c0_i32 = arith.constant 0 : i32
    %c0_i32_0 = arith.constant 0 : i32
    %c0_i32_1 = arith.constant 0 : i32
    return %arg0, %c0_i32, %c0_i32_0 : i32, i32, i32
  }
  func.func @transform_2(%arg0: i32) -> (i32, i32, i32) {
    %c0_i32 = arith.constant 0 : i32
    %c0_i32_0 = arith.constant 0 : i32
    %c0_i32_1 = arith.constant 0 : i32
    return %arg0, %c0_i32, %c0_i32_0 : i32, i32, i32
  }
  func.func @transform_3(%arg0: i32) -> (i32, i32, i32) {
    %c0_i32 = arith.constant 0 : i32
    %c0_i32_0 = arith.constant 0 : i32
    %c0_i32_1 = arith.constant 0 : i32
    return %arg0, %c0_i32, %c0_i32_0 : i32, i32, i32
  }
  func.func @transform_4(%arg0: i32) -> (i32, i32, i32) {
    %c0_i32 = arith.constant 0 : i32
    %c0_i32_0 = arith.constant 0 : i32
    %c0_i32_1 = arith.constant 0 : i32
    return %arg0, %c0_i32, %c0_i32_0 : i32, i32, i32
  }
  func.func @transform_5(%arg0: i32) -> (i32, i32, i32) {
    %c0_i32 = arith.constant 0 : i32
    %c0_i32_0 = arith.constant 0 : i32
    %c0_i32_1 = arith.constant 0 : i32
    return %arg0, %c0_i32, %c0_i32_0 : i32, i32, i32
  }
  func.func @transform_6(%arg0: i32) -> (i32, i32, i32) {
    %c0_i32 = arith.constant 0 : i32
    %c0_i32_0 = arith.constant 0 : i32
    %c0_i32_1 = arith.constant 0 : i32
    return %arg0, %c0_i32, %c0_i32_0 : i32, i32, i32
  }
  func.func @transform_7(%arg0: i32) -> (i32, i32) {
    %c0_i32 = arith.constant 0 : i32
    %c0_i32_0 = arith.constant 0 : i32
    %c0_i32_1 = arith.constant 0 : i32
    return %c0_i32, %c0_i32_0 : i32, i32
  }
}

</mosaic_0001>

<bundles_post_ra>
// kernel: resnet1d_forward.2
= control target key start
LH: loop header
LB: loop body
LE: loop exit
PB: predicated region body
PF: predicated region fallthrough
CT: control target
= control target key end

     0   :  { %v548_v1 = vmov 0.0   ;;  %vm26_vm0 = vcmask 1040384   ;;  %s696_s1 = inlined_call_operand.vmem [shape: bf16[384,128], index: 1, kind: input, shape index: {}]   ;;  %s697_s0 = inlined_call_operand.vmem [shape: f32[32,128], index: 0, kind: input, shape index: {}]   ;;  %s698_s2 = inlined_call_operand.vmem [shape: f32[1,128], index: 2, kind: input, shape index: {}]   ;;  %s699_s3 = inlined_call_operand.vmem [shape: f32[1,128], index: 3, kind: input, shape index: {}]   ;;  %s700_s4 = inlined_call_operand.vmem [shape: f32[32,128], index: 4, kind: output, shape index: {}]  }
   0x1   :  { %v522_v0 = vld [vmem:[%s696_s1 + $0x40] sm:$0xff]   ;;  %18 = vst [vmem:[#allocation2] sm:$0x1] %v548_v1  ;;  %19 = vst [vmem:[#allocation2 + $0x30] sm:$0x1] %v548_v1  ;;  %v525_v4 = vld [vmem:[%s696_s1 + $0x48] sm:$0xff]  }
   0x2   :  { %20 = vst [vmem:[#allocation2 + $0x2f] sm:$0x1] %v548_v1  ;;  %21 = vst [vmem:[#allocation2 + $0x5f] sm:$0x1] %v548_v1  ;;  %v523_v2 = vld [vmem:[%s696_s1] sm:$0xff]   ;;  %463 = vmatprep.subr.bf16.mxu0 %v522_v0  ;;  %v526_v5 = vld [vmem:[%s696_s1 + $0x8] sm:$0xff]  }
   0x3   :  { %v524_v3 = vld [vmem:[%s696_s1 + $0x80] sm:$0xff]   ;;  %464 = vmatpush3.bf16.msra.mxu0 %v523_v2  ;;  %v527_v6 = vld [vmem:[%s696_s1 + $0x88] sm:$0xff]   ;;  %v528_v7 = vld [vmem:[%s696_s1 + $0x50] sm:$0xff]  }
   0x4   :  { %501 = vmatprep.subr.bf16.mxu1 %v524_v3  ;;  %465 = vmatprep.subr.bf16.mxu0 %v525_v4  ;;  %v529_v8 = vld [vmem:[%s696_s1 + $0x10] sm:$0xff]   ;;  %v531_v10 = vld [vmem:[%s696_s1 + $0x58] sm:$0xff]   ;;  %v534_v13 = vld [vmem:[%s696_s1 + $0x60] sm:$0xff]  }
   0x5   :  { %502 = vmatpush3.bf16.msra.mxu1 %v524_v3  ;;  %v530_v9 = vld [vmem:[%s696_s1 + $0x90] sm:$0xff]   ;;  %v532_v11 = vld [vmem:[%s696_s1 + $0x18] sm:$0xff]   ;;  %v536_v14 = vld [vmem:[%s696_s1 + $0xa0] sm:$0xff]  }
   0x6   :  { %503 = vmatprep.subr.bf16.mxu1 %v527_v6  ;;  %v533_v12 = vld [vmem:[%s696_s1 + $0x98] sm:$0xff]   ;;  %v535_v15 = vld [vmem:[%s696_s1 + $0x20] sm:$0xff]   ;;  %v537_v16 = vld [vmem:[%s696_s1 + $0x68] sm:$0xff]  }
   0x7   :  { %466 = vmatpush3.bf16.msra.mxu0 %v526_v5  ;;  %v539_v17 = vld [vmem:[%s696_s1 + $0xa8] sm:$0xff]   ;;  %v540_v19 = vld [vmem:[%s696_s1 + $0x70] sm:$0xff]   ;;  %v543_v22 = vld [vmem:[%s696_s1 + $0x78] sm:$0xff]  }
   0x8   :  { %467 = vmatprep.subr.bf16.mxu0 %v528_v7  ;;  %v538_v18 = vld [vmem:[%s696_s1 + $0x28] sm:$0xff]   ;;  %v541_v20 = vld [vmem:[%s696_s1 + $0x30] sm:$0xff]   ;;  %v545_v23 = vld [vmem:[%s696_s1 + $0xb8] sm:$0xff]  }
   0x9   :  { %504 = vmatpush3.bf16.msra.mxu1 %v527_v6  ;;  %v542_v21 = vld [vmem:[%s696_s1 + $0xb0] sm:$0xff]   ;;  %v45_v24 = vld [vmem:[%s697_s0] sm:$0xff]  ;;  %v46_v25 = vld [vmem:[%s697_s0 + $0x8] sm:$0xff] }
   0xa   :  { %505 = vmatprep.subr.bf16.mxu1 %v530_v9  ;;  %v23_v26 = vld [vmem:[%s697_s0 + $0x8] sm:$0x7f]  ;;  %v122_v27 = vpack.c.bf16 %v46_v25, %v45_v24  ;;  %v27_v28 = vrot.slane %v45_v24, 7  ;;  %v57_v32 = vld [vmem:[%s697_s0 + $0x11] sm:$0xff]  ;;  %v58_v33 = vld [vmem:[%s697_s0 + $0x19] sm:$0x7f] }
   0xb   :  { %468 = vmatpush3.bf16.msra.mxu0 %v529_v8  ;;  %v28_v29 = vrot.slane %v23_v26, 7  ;;  %v53_v30 = vld [vmem:[%s697_s0 + $0x1] sm:$0xff]  ;;  %v54_v31 = vld [vmem:[%s697_s0 + $0x9] sm:$0x7f]  ;;  %v49_v34 = vld [vmem:[%s697_s0 + $0x10] sm:$0xff] }
   0xc   :  { %469 = vmatprep.subr.bf16.mxu0 %v531_v10  ;;  %56 = vst [vmem:[#allocation2 + $0x28] sm:$0x7f] %v54_v31  ;;  %v50_v35 = vld [vmem:[%s697_s0 + $0x18] sm:$0xff]  ;;  %303 = vmatprep.mubr.bf16.mxu0 %v122_v27  ;;  %32 = vst [vmem:[#allocation2] sm:$0xfe] %v27_v28  ;;  %v38_v39 = vrot.slane %v49_v34, 7 }
   0xd   :  { %506 = vmatpush3.bf16.msra.mxu1 %v530_v9  ;;  %v544_v36 = vld [vmem:[%s696_s1 + $0x38] sm:$0xff]   ;;  %v29_v37 = vsel %vm26_vm0, %v27_v28, %v28_v29  ;;  %60 = vst [vmem:[#allocation2 + $0x58] sm:$0x7f] %v58_v33  ;;  %v125_v46 = vpack.c.bf16 %v50_v35, %v49_v34 }
   0xe   :  { %507 = vmatprep.subr.bf16.mxu1 %v533_v12  ;;  %v35_v38 = vld [vmem:[%s697_s0 + $0x18] sm:$0x7f]  ;;  %43 = vst [vmem:[#allocation2 + $0x30] sm:$0xfe] %v38_v39 }
   0xf   :  { %470 = vmatpush3.bf16.msra.mxu0 %v532_v11  ;;  %v39_v40 = vrot.slane %v35_v38, 7 }
  0x10   :  { %471 = vmatprep.subr.bf16.mxu0 %v534_v13 }
  0x11   :  { %508 = vmatpush3.bf16.msra.mxu1 %v533_v12  ;;  %v40_v41 = vsel %vm26_vm0, %v38_v39, %v39_v40 }
  0x12   :  { %509 = vmatprep.subr.bf16.mxu1 %v536_v14 }
  0x13   :  { %472 = vmatpush3.bf16.msra.mxu0 %v535_v15  ;;  %v114_v42 = vld [vmem:[#allocation2 + $0x28] sm:$0xff]  ;;  %v109_v43 = vld [vmem:[#allocation2] sm:$0xff] }
  0x14   :  { %473 = vmatprep.subr.bf16.mxu0 %v537_v16  ;;  %v123_v44 = vpack.c.bf16 %v114_v42, %v53_v30  ;;  %v120_v45 = vld [vmem:[#allocation2 + $0x58] sm:$0xff]  ;;  %v121_v47 = vpack.c.bf16 %v29_v37, %v109_v43  ;;  %v461_v37 = vld [vmem:[%s698_s2] ss:$0 sm:$0xff] }
  0x15   :  { %510 = vmatpush3.bf16.msra.mxu1 %v536_v14  ;;  %v126_v48 = vpack.c.bf16 %v120_v45, %v57_v32  ;;  %v115_v49 = vld [vmem:[#allocation2 + $0x30] sm:$0xff]  ;;  %v462_v42 = vld [vmem:[%s699_s3] ss:$0 sm:$0xff] }
  0x16   :  { %511 = vmatprep.subr.bf16.mxu1 %v539_v17  ;;  %517 = vmatprep.mubr.bf16.mxu1 %v123_v44  ;;  %v124_v50 = vpack.c.bf16 %v40_v41, %v115_v49 }
  0x17   :  { %474 = vmatpush3.bf16.msra.mxu0 %v538_v18 }
  0x18   :  { %475 = vmatprep.subr.bf16.mxu0 %v540_v19 }
  0x19   :  { %512 = vmatpush3.bf16.msra.mxu1 %v539_v17 }
  0x1a   :  { %513 = vmatprep.subr.bf16.mxu1 %v542_v21 }
  0x1b   :  { %476 = vmatpush3.bf16.msra.mxu0 %v541_v20 }
  0x1c   :  { %477 = vmatprep.subr.bf16.mxu0 %v543_v22 }
  0x1d   :  { %514 = vmatpush3.bf16.msra.mxu1 %v542_v21 }
  0x1e   :  { %515 = vmatprep.subr.bf16.mxu1 %v545_v23 }
  0x1f   :  { %478 = vmatpush3.bf16.msra.mxu0 %v544_v36 }
  0x21   :  { %516 = vmatpush3.bf16.msra.mxu1 %v545_v23 }
  0x22   :  { %304 = vmatmul.mubr.bf16.vlgmr.msra.gmra.mrb[0].mxu0 %v121_v47 }
  0x23   :  { %311 = vmatprep.mubr.bf16.mxu0 %v125_v46 }
  0x24   :  { %518 = vmatmul.mubr.bf16.vlgmr.msra.gmra.mrb[0].mxu1 %v126_v48 }
  0x2a   :  { %312 = vmatmul.mubr.bf16.gmra.mrb[4].mxu0 %v124_v50 }
  0xf5   :  { %v479_v51 = vpop.f32.mrb[0].mxu0 }
  0xf6   :  { %v480_v53 = vpop.f32.mrb[1].mxu0 }
  0xf7   :  { %v519_v52 = vpop.f32.mrb[0].mxu1  ;;  %v481_v55 = vadd.f32 %v480_v53, %v479_v51  ;;  %v482_v56 = vpop.f32.mrb[2].mxu0 }
  0xf8   :  { %v354_v54 = vpop.f32.mrb[1].mxu1  ;;  %v483_v58 = vpop.f32.mrb[3].mxu0 }
  0xf9   :  { %v520_v57 = vpop.f32.mrb[2].mxu1  ;;  %v484_v60 = vadd.f32 %v483_v58, %v482_v56  ;;  %v355_v61 = vadd.f32 %v481_v55, %v354_v54 }
  0xfa   :  { %v357_v59 = vpop.f32.mrb[3].mxu1 }
  0xfb   :  { %v358_v62 = vadd.f32 %v484_v60, %v357_v59 }
  0xfd   :  { %v371_v63 = vadd.f32 %v358_v62, %v355_v61  ;;  %v485_v0 = vpop.f32.mrb[4].mxu0 }
  0xfe   :  { %v486_v1 = vpop.f32.mrb[5].mxu0 }
  0xff   :  { %v487_v2 = vadd.f32 %v486_v1, %v485_v0  ;;  %v488_v3 = vpop.f32.mrb[6].mxu0 }
 0x100   :  { %v489_v4 = vpop.f32.mrb[7].mxu0 }
 0x101   :  { %v363_v5 = vadd.f32 %v519_v52, %v487_v2  ;;  %v490_v6 = vadd.f32 %v489_v4, %v488_v3 }
 0x103   :  { %v372_v7 = vadd.f32 %v371_v63, %v363_v5  ;;  %v366_v8 = vadd.f32 %v520_v57, %v490_v6 }
 0x105   :  { %v373_v9 = vadd.f32 %v372_v7, %v366_v8 }
 0x107   :  { %v374_v10 = vrot.slane %v373_v9, 4 }
 0x109   :  { %v375_v11 = vadd.f32 %v374_v10, %v373_v9 }
 0x10b   :  { %v376_v12 = vrot.slane %v375_v11, 2 }
 0x10d   :  { %v377_v13 = vadd.f32 %v376_v12, %v375_v11 }
 0x10f   :  { %v378_v14 = vrot.slane %v377_v13, 1 }
 0x111   :  { %v379_v15 = vadd.f32 %v378_v14, %v377_v13 }
 0x113   :  { %v380_v16 = vmul.f32 0.03125, %v379_v15 }
 0x115   :  { %v381_v17 = vsub.f32 %v355_v61, %v380_v16  ;;  %v382_v18 = vsub.f32 %v358_v62, %v380_v16  ;;  %v383_v19 = vsub.f32 %v363_v5, %v380_v16  ;;  %v384_v20 = vsub.f32 %v366_v8, %v380_v16 }
 0x117   :  { %v385_v21 = vmul.f32 %v381_v17, %v381_v17  ;;  %v386_v22 = vmul.f32 %v382_v18, %v382_v18  ;;  %v387_v23 = vmul.f32 %v383_v19, %v383_v19  ;;  %v388_v25 = vmul.f32 %v384_v20, %v384_v20 }
 0x119   :  { %v389_v24 = vadd.f32 %v386_v22, %v385_v21 }
 0x11b   :  { %v390_v26 = vadd.f32 %v389_v24, %v387_v23 }
 0x11d   :  { %v391_v27 = vadd.f32 %v390_v26, %v388_v25 }
 0x11f   :  { %v392_v28 = vrot.slane %v391_v27, 4 }
 0x121   :  { %v393_v29 = vadd.f32 %v392_v28, %v391_v27 }
 0x123   :  { %v394_v30 = vrot.slane %v393_v29, 2 }
 0x125   :  { %v395_v31 = vadd.f32 %v394_v30, %v393_v29 }
 0x127   :  { %v396_v32 = vrot.slane %v395_v31, 1 }
 0x129   :  { %v397_v33 = vadd.f32 %v396_v32, %v395_v31 }
 0x12b   :  { %v398_v34 = vmul.f32 0.03125, %v397_v33 }
 0x12d   :  { %v399_v35 = vadd.f32 1e-05, %v398_v34 }
 0x12f   :  { %546 = vrsqrt.f32 %v399_v35 }
 0x139   :  { %v547_v36 = vpop.eup %546 }
 0x13a   :  { %v401_v38 = vmul.f32 %v547_v36, %v381_v17  ;;  %v402_v39 = vmul.f32 %v547_v36, %v382_v18  ;;  %v403_v40 = vmul.f32 %v547_v36, %v383_v19  ;;  %v404_v41 = vmul.f32 %v547_v36, %v384_v20 }
 0x13c   :  { %v411_v43 = vmul.f32 %v461_v37, %v401_v38  ;;  %v412_v44 = vmul.f32 %v461_v37, %v402_v39  ;;  %v413_v45 = vmul.f32 %v461_v37, %v403_v40  ;;  %v414_v46 = vmul.f32 %v461_v37, %v404_v41 }
 0x13e   :  { %v421_v47 = vadd.f32 %v462_v42, %v411_v43  ;;  %v422_v48 = vadd.f32 %v462_v42, %v412_v44  ;;  %v423_v49 = vadd.f32 %v462_v42, %v413_v45  ;;  %v424_v50 = vadd.f32 %v462_v42, %v414_v46 }
 0x140   :  { %v425_v51 = vmax.f32 %v421_v47, 0.0  ;;  %v426_v52 = vmax.f32 %v422_v48, 0.0  ;;  %v427_v53 = vmax.f32 %v423_v49, 0.0  ;;  %v428_v54 = vmax.f32 %v424_v50, 0.0 }
 0x142   :  { %429 = vst [vmem:[%s700_s4] sm:$0xff] %v425_v51  ;;  %430 = vst [vmem:[%s700_s4 + $0x8] sm:$0xff] %v426_v52 }
 0x143   :  { %431 = vst [vmem:[%s700_s4 + $0x10] sm:$0xff] %v427_v53  ;;  %432 = vst [vmem:[%s700_s4 + $0x18] sm:$0xff] %v428_v54 }

// kernel: resnet1d_forward.3
= control target key start
LH: loop header
LB: loop body
LE: loop exit
PB: predicated region body
PF: predicated region fallthrough
CT: control target
= control target key end

     0   :  { %s1545_s24 = smov 0   ;;  %s1743_s0 = inlined_call_operand.vmem [shape: f32[32,128], index: 0, kind: input, shape index: {}, may-alias: {0,7}]   ;;  %s1744_s1 = inlined_call_operand.vmem [shape: bf16[2,384,128], index: 1, kind: input, shape index: {}]   ;;  %s1745_s2 = inlined_call_operand.vmem [shape: f32[2,1,128], index: 2, kind: input, shape index: {}]   ;;  %s1746_s3 = inlined_call_operand.vmem [shape: f32[2,1,128], index: 3, kind: input, shape index: {}]   ;;  %s1747_s4 = inlined_call_operand.vmem [shape: bf16[2,384,128], index: 4, kind: input, shape index: {}]   ;;  %s1748_s5 = inlined_call_operand.vmem [shape: f32[2,1,128], index: 5, kind: input, shape index: {}]   ;;  %s1749_s6 = inlined_call_operand.vmem [shape: f32[2,1,128], index: 6, kind: input, shape index: {}]   ;;  %s1750_s7 = inlined_call_operand.vmem [shape: f32[32,128], index: 7, kind: output, shape index: {}, may-alias: {0,7}]  }
   0x1 LB: > { %s1257_s25 = sadd.s32 4294967295, %s1502_s24   ;;  %p1260_p0 = scmp.ge.s32.totalorder %s1502_s24, 1  ;;  %s1502_s24 = sphi %s1545_s24, %s17_s24  }
   0x2   : > { %p274_p1 = scmp.lt.s32.totalorder %s1502_s24, 3 }
   0x4   : > { %p275_p2 = pnand %p1260_p0, %p274_p1 }
   0x5   : > { %p318_p3 = scmp.lt.s32.totalorder (!%p275_p2), %s1257_s25, 1  ;;  %p1263_p4 = scmp.ne.s32.totalorder (!%p275_p2), %s1257_s25, 0 }
   0x6   : > { %278 = sbr.rel (%p275_p2) target bundleno = 650 (0x28a), region = 48 }
   0xd   : > { %s1553_s26 = scalar_select %p318_p3, %s1257_s25, 1 }
   0xe   : > { %344 = sbr.rel (%p1263_p4) target bundleno = 25 (0x19), region = 52  ;;  %v345_v0 = vld [vmem:[%s1743_s0] sm:$0xff] (!%p1263_p4)  ;;  %v346_v1 = vld [vmem:[%s1743_s0 + $0x8] sm:$0xff] (!%p1263_p4)  ;;  %v347_v2 = vld [vmem:[%s1743_s0 + $0x10] sm:$0xff] (!%p1263_p4)  ;;  %v1504_v4 = vmov (!%p1263_p4), 0.0  }
   0xf   : > { %s1434_s27 = smul.u32 192, %s1553_s26  ;;  %s325_s30 = scalar_lea.vmem %s1745_s2, %s1553_s26  ;;  %349 = vst [vmem:[%s1750_s7] sm:$0xff] (!%p1263_p4), %v345_v0  ;;  %350 = vst [vmem:[%s1750_s7 + $0x8] sm:$0xff] (!%p1263_p4), %v346_v1 }
  0x10   : > { %s328_s10 = scalar_lea.vmem %s1746_s3, %s1553_s26  ;;  %s336_s13 = scalar_lea.vmem %s1748_s5, %s1553_s26  ;;  %351 = vst [vmem:[%s1750_s7 + $0x10] sm:$0xff] (!%p1263_p4), %v347_v2  ;;  %353 = vst [vmem:[#allocation2] sm:$0x1] (!%p1263_p4), %v1504_v4 }
  0x11   : > { %s1571_s16 = scalar_lea.vmem %s1744_s1, %s1434_s27  ;;  %s1576_s19 = scalar_lea.vmem %s1747_s4, %s1434_s27  ;;  %354 = vst [vmem:[#allocation2 + $0x30] sm:$0x1] (!%p1263_p4), %v1504_v4  ;;  %355 = vst [vmem:[#allocation2 + $0x2f] sm:$0x1] (!%p1263_p4), %v1504_v4 }
  0x12   : > { %s339_s22 = scalar_lea.vmem %s1749_s6, %s1553_s26  ;;  %356 = vst [vmem:[#allocation2 + $0x5f] sm:$0x1] (!%p1263_p4), %v1504_v4 }
  0x17   : > { %v348_v3 = vld [vmem:[%s1743_s0 + $0x18] sm:$0xff] }
  0x18   : > { %352 = vst [vmem:[%s1750_s7 + $0x18] sm:$0xff] %v348_v3 }
  0x19 PF: > { %v1444_v5 = vld [vmem:[%s1571_s16 + $0x40] sm:$0xff]   ;;  %v1447_v8 = vld [vmem:[%s1571_s16 + $0x48] sm:$0xff]   ;;  %v1450_v11 = vld [vmem:[%s1571_s16 + $0x50] sm:$0xff]   ;;  %vm361_vm0 = vcmask 1040384   ;;  %vm786_vm1 = vcmask 1046528  }
  0x1a   : > { %v1445_v6 = vld [vmem:[%s1571_s16] sm:$0xff]   ;;  %1318 = vmatprep.subr.bf16.mxu0 %v1444_v5  ;;  %v1448_v9 = vld [vmem:[%s1571_s16 + $0x8] sm:$0xff]   ;;  %v1451_v12 = vld [vmem:[%s1571_s16 + $0x10] sm:$0xff]  }
  0x1b   : > { %v1446_v7 = vld [vmem:[%s1571_s16 + $0x80] sm:$0xff]   ;;  %1319 = vmatpush3.bf16.msra.mxu0 %v1445_v6  ;;  %v1449_v10 = vld [vmem:[%s1571_s16 + $0x88] sm:$0xff]   ;;  %v1452_v13 = vld [vmem:[%s1571_s16 + $0x90] sm:$0xff]  }
  0x1c   : > { %1394 = vmatprep.subr.bf16.mxu1 %v1446_v7  ;;  %1320 = vmatprep.subr.bf16.mxu0 %v1447_v8  ;;  %v1453_v14 = vld [vmem:[%s1571_s16 + $0x58] sm:$0xff]   ;;  %v1456_v17 = vld [vmem:[%s1571_s16 + $0x60] sm:$0xff]   ;;  %v1459_v20 = vld [vmem:[%s1571_s16 + $0x68] sm:$0xff]  }
  0x1d   : > { %1395 = vmatpush3.bf16.msra.mxu1 %v1446_v7  ;;  %v1454_v15 = vld [vmem:[%s1571_s16 + $0x18] sm:$0xff]   ;;  %v1458_v18 = vld [vmem:[%s1571_s16 + $0xa0] sm:$0xff]   ;;  %v1461_v21 = vld [vmem:[%s1571_s16 + $0xa8] sm:$0xff]  }
  0x1e   : > { %1396 = vmatprep.subr.bf16.mxu1 %v1449_v10  ;;  %v1455_v16 = vld [vmem:[%s1571_s16 + $0x98] sm:$0xff]   ;;  %v1457_v19 = vld [vmem:[%s1571_s16 + $0x20] sm:$0xff]   ;;  %v1460_v22 = vld [vmem:[%s1571_s16 + $0x28] sm:$0xff]  }
  0x1f   : > { %1321 = vmatpush3.bf16.msra.mxu0 %v1448_v9  ;;  %v1462_v23 = vld [vmem:[%s1571_s16 + $0x70] sm:$0xff]   ;;  %v1465_v26 = vld [vmem:[%s1571_s16 + $0x78] sm:$0xff]   ;;  %v1631_v27 = vld [vmem:[%s1750_s7] sm:$0xff] }
  0x20   : > { %1322 = vmatprep.subr.bf16.mxu0 %v1450_v11  ;;  %v1464_v24 = vld [vmem:[%s1571_s16 + $0xb0] sm:$0xff]   ;;  %v1636_v28 = vld [vmem:[%s1750_s7 + $0x8] sm:$0xff]  ;;  %v362_v31 = vrot.slane %v1631_v27, 7  ;;  %v1467_v33 = vld [vmem:[%s1571_s16 + $0xb8] sm:$0xff]  }
  0x21   : > { %1397 = vmatpush3.bf16.msra.mxu1 %v1449_v10  ;;  %v1463_v25 = vld [vmem:[%s1571_s16 + $0x30] sm:$0xff]   ;;  %v457_v29 = vpack.c.bf16 %v1636_v28, %v1631_v27  ;;  %v358_v30 = vld [vmem:[%s1750_s7 + $0x8] sm:$0x7f]  ;;  %v393_v34 = vld [vmem:[%s1750_s7 + $0x19] sm:$0x7f] }
  0x22   : > { %1398 = vmatprep.subr.bf16.mxu1 %v1452_v13  ;;  %v389_v32 = vld [vmem:[%s1750_s7 + $0x9] sm:$0x7f]  ;;  %v1654_v35 = vld [vmem:[%s1750_s7 + $0x10] sm:$0xff]  ;;  %v1466_v36 = vld [vmem:[%s1571_s16 + $0x38] sm:$0xff]   ;;  %367 = vst [vmem:[#allocation2] sm:$0xfe] %v362_v31 }
  0x23   : > { %1323 = vmatpush3.bf16.msra.mxu0 %v1451_v12  ;;  %391 = vst [vmem:[#allocation2 + $0x28] sm:$0x7f] %v389_v32  ;;  %638 = vmatprep.mubr.bf16.mxu0 %v457_v29  ;;  %395 = vst [vmem:[#allocation2 + $0x58] sm:$0x7f] %v393_v34  ;;  %v373_v37 = vrot.slane %v1654_v35, 7  ;;  %v363_v38 = vrot.slane %v358_v30, 7 }
  0x24   : > { %1324 = vmatprep.subr.bf16.mxu0 %v1453_v14  ;;  %v388_v39 = vld [vmem:[%s1750_s7 + $0x1] sm:$0xff]  ;;  %v1664_v40 = vld [vmem:[%s1750_s7 + $0x18] sm:$0xff]  ;;  %v1474_v61 = vld [vmem:[%s1576_s19 + $0x50] sm:$0xff]  }
  0x25   : > { %1399 = vmatpush3.bf16.msra.mxu1 %v1452_v13  ;;  %v370_v41 = vld [vmem:[%s1750_s7 + $0x18] sm:$0x7f]  ;;  %378 = vst [vmem:[#allocation2 + $0x30] sm:$0xfe] %v373_v37  ;;  %v364_v43 = vsel %vm361_vm0, %v362_v31, %v363_v38  ;;  %v460_v48 = vpack.c.bf16 %v1664_v40, %v1654_v35  ;;  %v1468_v55 = vld [vmem:[%s1576_s19 + $0x40] sm:$0xff]   ;;  %v1471_v58 = vld [vmem:[%s1576_s19 + $0x48] sm:$0xff]  }
  0x26   : > { %1400 = vmatprep.subr.bf16.mxu1 %v1455_v16  ;;  %v392_v42 = vld [vmem:[%s1750_s7 + $0x11] sm:$0xff]  ;;  %v374_v49 = vrot.slane %v370_v41, 7  ;;  %v1469_v56 = vld [vmem:[%s1576_s19] sm:$0xff]   ;;  %v1472_v59 = vld [vmem:[%s1576_s19 + $0x8] sm:$0xff]  }
  0x27   : > { %1325 = vmatpush3.bf16.msra.mxu0 %v1454_v15  ;;  %v1470_v57 = vld [vmem:[%s1576_s19 + $0x80] sm:$0xff]   ;;  %v1473_v60 = vld [vmem:[%s1576_s19 + $0x88] sm:$0xff]   ;;  %v1475_v62 = vld [vmem:[%s1576_s19 + $0x10] sm:$0xff]  }
  0x28   : > { %1326 = vmatprep.subr.bf16.mxu0 %v1456_v17  ;;  %v375_v53 = vsel %vm361_vm0, %v373_v37, %v374_v49  ;;  %v1476_v63 = vld [vmem:[%s1576_s19 + $0x90] sm:$0xff]   ;;  %v1477_v0 = vld [vmem:[%s1576_s19 + $0x58] sm:$0xff]   ;;  %v1480_v3 = vld [vmem:[%s1576_s19 + $0x60] sm:$0xff]  }
  0x29   : > { %1401 = vmatpush3.bf16.msra.mxu1 %v1455_v16  ;;  %v444_v45 = vld [vmem:[#allocation2] sm:$0xff]  ;;  %v1478_v1 = vld [vmem:[%s1576_s19 + $0x18] sm:$0xff]   ;;  %v1483_v6 = vld [vmem:[%s1576_s19 + $0x68] sm:$0xff]  }
  0x2a   : > { %1402 = vmatprep.subr.bf16.mxu1 %v1458_v18  ;;  %v449_v44 = vld [vmem:[#allocation2 + $0x28] sm:$0xff]  ;;  %v455_v47 = vld [vmem:[#allocation2 + $0x58] sm:$0xff]  ;;  %v456_v50 = vpack.c.bf16 %v364_v43, %v444_v45  ;;  %v1481_v4 = vld [vmem:[%s1576_s19 + $0x20] sm:$0xff]  }
  0x2b   : > { %1327 = vmatpush3.bf16.msra.mxu0 %v1457_v19  ;;  %v458_v46 = vpack.c.bf16 %v449_v44, %v388_v39  ;;  %v461_v51 = vpack.c.bf16 %v455_v47, %v392_v42  ;;  %v1479_v2 = vld [vmem:[%s1576_s19 + $0x98] sm:$0xff]   ;;  %v1482_v5 = vld [vmem:[%s1576_s19 + $0xa0] sm:$0xff]   ;;  %v1484_v7 = vld [vmem:[%s1576_s19 + $0x28] sm:$0xff]  }
  0x2c   : > { %1328 = vmatprep.subr.bf16.mxu0 %v1459_v20  ;;  %v450_v52 = vld [vmem:[#allocation2 + $0x30] sm:$0xff]  ;;  %v1485_v8 = vld [vmem:[%s1576_s19 + $0xa8] sm:$0xff]   ;;  %v1489_v12 = vld [vmem:[%s1576_s19 + $0x78] sm:$0xff]  }
  0x2d   : > { %1403 = vmatpush3.bf16.msra.mxu1 %v1458_v18  ;;  %1410 = vmatprep.mubr.bf16.mxu1 %v458_v46  ;;  %v459_v54 = vpack.c.bf16 %v375_v53, %v450_v52  ;;  %v1486_v9 = vld [vmem:[%s1576_s19 + $0x70] sm:$0xff]   ;;  %v1491_v13 = vld [vmem:[%s1576_s19 + $0xb8] sm:$0xff]  }
  0x2e   : > { %1404 = vmatprep.subr.bf16.mxu1 %v1461_v21  ;;  %v1487_v10 = vld [vmem:[%s1576_s19 + $0x30] sm:$0xff]   ;;  %v1490_v14 = vld [vmem:[%s1576_s19 + $0x38] sm:$0xff]  }
  0x2f   : > { %1329 = vmatpush3.bf16.msra.mxu0 %v1460_v22  ;;  %v1488_v11 = vld [vmem:[%s1576_s19 + $0xb0] sm:$0xff]  }
  0x30   : > { %1330 = vmatprep.subr.bf16.mxu0 %v1462_v23 }
  0x31   : > { %1405 = vmatpush3.bf16.msra.mxu1 %v1461_v21 }
  0x32   : > { %1406 = vmatprep.subr.bf16.mxu1 %v1464_v24 }
  0x33   : > { %1331 = vmatpush3.bf16.msra.mxu0 %v1463_v25 }
  0x34   : > { %1332 = vmatprep.subr.bf16.mxu0 %v1465_v26 }
  0x35   : > { %1407 = vmatpush3.bf16.msra.mxu1 %v1464_v24 }
  0x36   : > { %1408 = vmatprep.subr.bf16.mxu1 %v1467_v33 }
  0x37   : > { %1333 = vmatpush3.bf16.msra.mxu0 %v1466_v36 }
  0x38   : > { %1356 = vmatprep.subr.bf16.mxu0 %v1468_v55 }
  0x39   : > { %1409 = vmatpush3.bf16.msra.mxu1 %v1467_v33 }
  0x3a   : > { %639 = vmatmul.mubr.bf16.vlgmr.msra.gmra.mrb[0].mxu0 %v456_v50  ;;  %1414 = vmatprep.subr.bf16.mxu1 %v1470_v57 }
  0x3b   : > { %646 = vmatprep.mubr.bf16.mxu0 %v460_v48  ;;  %1357 = vmatpush3.bf16.msra.mxu0 %v1469_v56 }
  0x3c   : > { %1411 = vmatmul.mubr.bf16.vlgmr.msra.gmra.mrb[0].mxu1 %v461_v51  ;;  %1358 = vmatprep.subr.bf16.mxu0 %v1471_v58 }
  0x3d   : > { %1415 = vmatpush3.bf16.msra.mxu1 %v1470_v57 }
  0x3e   : > { %1416 = vmatprep.subr.bf16.mxu1 %v1473_v60 }
  0x3f   : > { %1359 = vmatpush3.bf16.msra.mxu0 %v1472_v59 }
  0x40   : > { %1360 = vmatprep.subr.bf16.mxu0 %v1474_v61 }
  0x41   : > { %1417 = vmatpush3.bf16.msra.mxu1 %v1473_v60 }
  0x42   : > { %647 = vmatmul.mubr.bf16.gmra.mrb[4].mxu0 %v459_v54  ;;  %1418 = vmatprep.subr.bf16.mxu1 %v1476_v63 }
  0x43   : > { %1361 = vmatpush3.bf16.msra.mxu0 %v1475_v62 }
  0x44   : > { %1362 = vmatprep.subr.bf16.mxu0 %v1477_v0 }
  0x45   : > { %1419 = vmatpush3.bf16.msra.mxu1 %v1476_v63 }
  0x46   : > { %1420 = vmatprep.subr.bf16.mxu1 %v1479_v2 }
  0x47   : > { %1363 = vmatpush3.bf16.msra.mxu0 %v1478_v1 }
  0x48   : > { %1364 = vmatprep.subr.bf16.mxu0 %v1480_v3 }
  0x49   : > { %1421 = vmatpush3.bf16.msra.mxu1 %v1479_v2 }
  0x4a   : > { %1422 = vmatprep.subr.bf16.mxu1 %v1482_v5 }
  0x4b   : > { %1365 = vmatpush3.bf16.msra.mxu0 %v1481_v4 }
  0x4c   : > { %1366 = vmatprep.subr.bf16.mxu0 %v1483_v6 }
  0x4d   : > { %1423 = vmatpush3.bf16.msra.mxu1 %v1482_v5  ;;  %v1288_v5 = vld [vmem:[%s325_s30] ss:$0 sm:$0xff] }
  0x4e   : > { %1424 = vmatprep.subr.bf16.mxu1 %v1485_v8 }
  0x4f   : > { %1367 = vmatpush3.bf16.msra.mxu0 %v1484_v7 }
  0x50   : > { %1368 = vmatprep.subr.bf16.mxu0 %v1486_v9 }
  0x51   : > { %1425 = vmatpush3.bf16.msra.mxu1 %v1485_v8 }
  0x52   : > { %1426 = vmatprep.subr.bf16.mxu1 %v1488_v11 }
  0x53   : > { %1369 = vmatpush3.bf16.msra.mxu0 %v1487_v10  ;;  %v1289_v10 = vld [vmem:[%s328_s10] ss:$0 sm:$0xff] }
  0x54   : > { %1370 = vmatprep.subr.bf16.mxu0 %v1489_v12 }
  0x55   : > { %1427 = vmatpush3.bf16.msra.mxu1 %v1488_v11 }
  0x56   : > { %1428 = vmatprep.subr.bf16.mxu1 %v1491_v13 }
  0x57   : > { %1371 = vmatpush3.bf16.msra.mxu0 %v1490_v14 }
  0x59   : > { %1429 = vmatpush3.bf16.msra.mxu1 %v1491_v13 }
 0x10d   : > { %v1334_v15 = vpop.f32.mrb[0].mxu0 }
 0x10e   : > { %v1335_v17 = vpop.f32.mrb[1].mxu0 }
 0x10f   : > { %v1412_v16 = vpop.f32.mrb[0].mxu1  ;;  %v1336_v19 = vadd.f32 %v1335_v17, %v1334_v15  ;;  %v1337_v20 = vpop.f32.mrb[2].mxu0 }
 0x110   : > { %v689_v18 = vpop.f32.mrb[1].mxu1  ;;  %v1338_v22 = vpop.f32.mrb[3].mxu0 }
 0x111   : > { %v1413_v21 = vpop.f32.mrb[2].mxu1  ;;  %v1339_v24 = vadd.f32 %v1338_v22, %v1337_v20  ;;  %v690_v25 = vadd.f32 %v1336_v19, %v689_v18 }
 0x112   : > { %v692_v23 = vpop.f32.mrb[3].mxu1 }
 0x113   : > { %v693_v26 = vadd.f32 %v1339_v24, %v692_v23 }
 0x115   : > { %v706_v29 = vadd.f32 %v693_v26, %v690_v25  ;;  %v1340_v30 = vpop.f32.mrb[4].mxu0 }
 0x116   : > { %v1341_v31 = vpop.f32.mrb[5].mxu0 }
 0x117   : > { %v1342_v32 = vadd.f32 %v1341_v31, %v1340_v30  ;;  %v1343_v33 = vpop.f32.mrb[6].mxu0 }
 0x118   : > { %v1344_v34 = vpop.f32.mrb[7].mxu0 }
 0x119   : > { %v698_v36 = vadd.f32 %v1412_v16, %v1342_v32  ;;  %v1345_v37 = vadd.f32 %v1344_v34, %v1343_v33 }
 0x11b   : > { %v707_v38 = vadd.f32 %v706_v29, %v698_v36  ;;  %v701_v39 = vadd.f32 %v1413_v21, %v1345_v37 }
 0x11d   : > { %v708_v41 = vadd.f32 %v707_v38, %v701_v39 }
 0x11f   : > { %v709_v42 = vrot.slane %v708_v41, 4 }
 0x121   : > { %v710_v43 = vadd.f32 %v709_v42, %v708_v41 }
 0x123   : > { %v711_v44 = vrot.slane %v710_v43, 2 }
 0x125   : > { %v712_v45 = vadd.f32 %v711_v44, %v710_v43 }
 0x127   : > { %v713_v46 = vrot.slane %v712_v45, 1 }
 0x129   : > { %v714_v47 = vadd.f32 %v713_v46, %v712_v45 }
 0x12b   : > { %v715_v48 = vmul.f32 0.03125, %v714_v47 }
 0x12d   : > { %v716_v49 = vsub.f32 %v690_v25, %v715_v48  ;;  %v717_v50 = vsub.f32 %v693_v26, %v715_v48  ;;  %v718_v51 = vsub.f32 %v698_v36, %v715_v48  ;;  %v719_v52 = vsub.f32 %v701_v39, %v715_v48 }
 0x12f   : > { %v720_v53 = vmul.f32 %v716_v49, %v716_v49  ;;  %v721_v54 = vmul.f32 %v717_v50, %v717_v50  ;;  %v722_v55 = vmul.f32 %v718_v51, %v718_v51  ;;  %v723_v57 = vmul.f32 %v719_v52, %v719_v52 }
 0x131   : > { %v724_v56 = vadd.f32 %v721_v54, %v720_v53 }
 0x133   : > { %v725_v58 = vadd.f32 %v724_v56, %v722_v55 }
 0x135   : > { %v726_v59 = vadd.f32 %v725_v58, %v723_v57 }
 0x137   : > { %v727_v60 = vrot.slane %v726_v59, 4 }
 0x139   : > { %v728_v61 = vadd.f32 %v727_v60, %v726_v59 }
 0x13b   : > { %v729_v62 = vrot.slane %v728_v61, 2 }
 0x13d   : > { %v730_v63 = vadd.f32 %v729_v62, %v728_v61 }
 0x13f   : > { %v731_v0 = vrot.slane %v730_v63, 1 }
 0x141   : > { %v732_v1 = vadd.f32 %v731_v0, %v730_v63 }
 0x143   : > { %v733_v2 = vmul.f32 0.03125, %v732_v1 }
 0x145   : > { %v734_v3 = vadd.f32 1e-05, %v733_v2 }
 0x147   : > { %1492 = vrsqrt.f32 %v734_v3 }
 0x151   : > { %v1493_v4 = vpop.eup %1492 }
 0x152   : > { %v736_v6 = vmul.f32 %v1493_v4, %v716_v49  ;;  %v737_v7 = vmul.f32 %v1493_v4, %v717_v50  ;;  %v738_v8 = vmul.f32 %v1493_v4, %v718_v51  ;;  %v739_v9 = vmul.f32 %v1493_v4, %v719_v52 }
 0x154   : > { %v746_v11 = vmul.f32 %v1288_v5, %v736_v6  ;;  %v747_v12 = vmul.f32 %v1288_v5, %v737_v7  ;;  %v748_v13 = vmul.f32 %v1288_v5, %v738_v8  ;;  %v749_v14 = vmul.f32 %v1288_v5, %v739_v9 }
 0x156   : > { %v756_v15 = vadd.f32 %v1289_v10, %v746_v11  ;;  %v757_v16 = vadd.f32 %v1289_v10, %v747_v12  ;;  %v758_v17 = vadd.f32 %v1289_v10, %v748_v13  ;;  %v759_v18 = vadd.f32 %v1289_v10, %v749_v14 }
 0x158   : > { %v760_v19 = vmax.f32 %v756_v15, 0.0  ;;  %v761_v20 = vmax.f32 %v757_v16, 0.0  ;;  %v762_v21 = vmax.f32 %v758_v17, 0.0  ;;  %v763_v22 = vmax.f32 %v759_v18, 0.0 }
 0x15a   : > { %v766_v23 = vrot.slane %v760_v19, 7  ;;  %v767_v24 = vrot.slane %v761_v20, 7  ;;  %v775_v25 = vrot.slane %v762_v21, 7  ;;  %v776_v26 = vrot.slane %v763_v22, 7 }
 0x15b   : > { %v787_v29 = vrot.slane %v760_v19, 1  ;;  %v788_v30 = vrot.slane %v761_v20, 1  ;;  %v794_v31 = vrot.slane %v762_v21, 1  ;;  %v795_v32 = vrot.slane %v763_v22, 1 }
 0x15c   : > { %v768_v33 = vsel %vm361_vm0, %v766_v23, %v767_v24  ;;  %771 = vst [vmem:[#allocation2] sm:$0xfe] %v766_v23  ;;  %v777_v34 = vsel %vm361_vm0, %v775_v25, %v776_v26  ;;  %780 = vst [vmem:[#allocation2 + $0x30] sm:$0xfe] %v775_v25  ;;  %v862_v36 = vpack.c.bf16 %v761_v20, %v760_v19 }
 0x15d   : > { %v865_v37 = vpack.c.bf16 %v763_v22, %v762_v21  ;;  %v789_v38 = vsel %vm786_vm1, %v787_v29, %v788_v30  ;;  %793 = vst [vmem:[#allocation2 + $0x28] sm:$0x7f] %v788_v30  ;;  %v796_v39 = vsel %vm786_vm1, %v794_v31, %v795_v32  ;;  %800 = vst [vmem:[#allocation2 + $0x58] sm:$0x7f] %v795_v32 }
 0x15e   : > { %1043 = vmatprep.mubr.bf16.mxu0 %v862_v36 }
 0x163   : > { %v849_v41 = vld [vmem:[#allocation2] sm:$0xff]  ;;  %v855_v47 = vld [vmem:[#allocation2 + $0x30] sm:$0xff] }
 0x164   : > { %v861_v42 = vpack.c.bf16 %v768_v33, %v849_v41  ;;  %v854_v43 = vld [vmem:[#allocation2 + $0x28] sm:$0xff]  ;;  %v860_v44 = vld [vmem:[#allocation2 + $0x58] sm:$0xff]  ;;  %v864_v48 = vpack.c.bf16 %v777_v34, %v855_v47 }
 0x165   : > { %v863_v45 = vpack.c.bf16 %v854_v43, %v789_v38  ;;  %v866_v46 = vpack.c.bf16 %v860_v44, %v796_v39  ;;  %v1314_v38 = vld [vmem:[%s336_s13] ss:$0 sm:$0xff] }
 0x166   : > { %1044 = vmatmul.mubr.bf16.vlgmr.msra.gmra.mrb[8].mxu0 %v861_v42  ;;  %v1315_v44 = vld [vmem:[%s339_s22] ss:$0 sm:$0xff] }
 0x167   : > { %1430 = vmatprep.mubr.bf16.mxu1 %v863_v45  ;;  %1051 = vmatprep.mubr.bf16.mxu0 %v865_v37 }
 0x168   : > { %1431 = vmatmul.mubr.bf16.vlgmr.msra.gmra.mrb[4].mxu1 %v866_v46 }
 0x16e   : > { %1052 = vmatmul.mubr.bf16.gmra.mrb[12].mxu0 %v864_v48 }
 0x239   : > { %v1372_v49 = vpop.f32.mrb[8].mxu0 }
 0x23a   : > { %v1373_v50 = vpop.f32.mrb[9].mxu0 }
 0x23b   : > { %v1374_v51 = vadd.f32 %v1373_v50, %v1372_v49  ;;  %v1432_v52 = vpop.f32.mrb[4].mxu1  ;;  %v1375_v53 = vpop.f32.mrb[10].mxu0 }
 0x23c   : > { %v1094_v54 = vpop.f32.mrb[5].mxu1  ;;  %v1376_v55 = vpop.f32.mrb[11].mxu0 }
 0x23d   : > { %v1095_v56 = vadd.f32 %v1374_v51, %v1094_v54  ;;  %v1377_v57 = vadd.f32 %v1376_v55, %v1375_v53  ;;  %v1433_v58 = vpop.f32.mrb[6].mxu1 }
 0x23e   : > { %v1097_v59 = vpop.f32.mrb[7].mxu1 }
 0x23f   : > { %v1098_v60 = vadd.f32 %v1377_v57, %v1097_v59 }
 0x241   : > { %v1111_v61 = vadd.f32 %v1098_v60, %v1095_v56  ;;  %v1378_v62 = vpop.f32.mrb[12].mxu0 }
 0x242   : > { %v1379_v63 = vpop.f32.mrb[13].mxu0 }
 0x243   : > { %v1380_v0 = vadd.f32 %v1379_v63, %v1378_v62  ;;  %v1381_v1 = vpop.f32.mrb[14].mxu0 }
 0x244   : > { %v1382_v2 = vpop.f32.mrb[15].mxu0 }
 0x245   : > { %v1103_v3 = vadd.f32 %v1432_v52, %v1380_v0  ;;  %v1383_v4 = vadd.f32 %v1382_v2, %v1381_v1 }
 0x247   : > { %v1112_v5 = vadd.f32 %v1111_v61, %v1103_v3  ;;  %v1106_v6 = vadd.f32 %v1433_v58, %v1383_v4 }
 0x249   : > { %v1113_v7 = vadd.f32 %v1112_v5, %v1106_v6 }
 0x24b   : > { %v1114_v8 = vrot.slane %v1113_v7, 4 }
 0x24d   : > { %v1115_v9 = vadd.f32 %v1114_v8, %v1113_v7 }
 0x24f   : > { %v1116_v10 = vrot.slane %v1115_v9, 2 }
 0x251   : > { %v1117_v11 = vadd.f32 %v1116_v10, %v1115_v9 }
 0x253   : > { %v1118_v12 = vrot.slane %v1117_v11, 1 }
 0x255   : > { %v1119_v13 = vadd.f32 %v1118_v12, %v1117_v11 }
 0x257   : > { %v1120_v14 = vmul.f32 0.03125, %v1119_v13 }
 0x259   : > { %v1121_v15 = vsub.f32 %v1095_v56, %v1120_v14  ;;  %v1122_v16 = vsub.f32 %v1098_v60, %v1120_v14  ;;  %v1123_v17 = vsub.f32 %v1103_v3, %v1120_v14  ;;  %v1124_v18 = vsub.f32 %v1106_v6, %v1120_v14 }
 0x25b   : > { %v1125_v19 = vmul.f32 %v1121_v15, %v1121_v15  ;;  %v1126_v20 = vmul.f32 %v1122_v16, %v1122_v16  ;;  %v1127_v21 = vmul.f32 %v1123_v17, %v1123_v17  ;;  %v1128_v23 = vmul.f32 %v1124_v18, %v1124_v18 }
 0x25d   : > { %v1129_v22 = vadd.f32 %v1126_v20, %v1125_v19 }
 0x25f   : > { %v1130_v24 = vadd.f32 %v1129_v22, %v1127_v21 }
 0x261   : > { %v1131_v25 = vadd.f32 %v1130_v24, %v1128_v23 }
 0x263   : > { %v1132_v26 = vrot.slane %v1131_v25, 4 }
 0x265   : > { %v1133_v29 = vadd.f32 %v1132_v26, %v1131_v25 }
 0x267   : > { %v1134_v30 = vrot.slane %v1133_v29, 2 }
 0x269   : > { %v1135_v31 = vadd.f32 %v1134_v30, %v1133_v29 }
 0x26b   : > { %v1136_v32 = vrot.slane %v1135_v31, 1 }
 0x26d   : > { %v1137_v33 = vadd.f32 %v1136_v32, %v1135_v31 }
 0x26f   : > { %v1138_v34 = vmul.f32 0.03125, %v1137_v33 }
 0x271   : > { %v1139_v36 = vadd.f32 1e-05, %v1138_v34 }
 0x273   : > { %1494 = vrsqrt.f32 %v1139_v36 }
 0x27d   : > { %v1495_v37 = vpop.eup %1494 }
 0x27e   : > { %v1141_v39 = vmul.f32 %v1495_v37, %v1121_v15  ;;  %v1142_v41 = vmul.f32 %v1495_v37, %v1122_v16  ;;  %v1143_v42 = vmul.f32 %v1495_v37, %v1123_v17  ;;  %v1144_v43 = vmul.f32 %v1495_v37, %v1124_v18 }
 0x280   : > { %v1151_v45 = vmul.f32 %v1314_v38, %v1141_v39  ;;  %v1152_v46 = vmul.f32 %v1314_v38, %v1142_v41  ;;  %v1153_v47 = vmul.f32 %v1314_v38, %v1143_v42  ;;  %v1154_v48 = vmul.f32 %v1314_v38, %v1144_v43 }
 0x282   : > { %v1161_v49 = vadd.f32 %v1315_v44, %v1151_v45  ;;  %v1162_v50 = vadd.f32 %v1315_v44, %v1152_v46  ;;  %v1163_v51 = vadd.f32 %v1315_v44, %v1153_v47  ;;  %v1164_v52 = vadd.f32 %v1315_v44, %v1154_v48 }
 0x284   : > { %v1169_v53 = vadd.f32 %v1161_v49, %v1631_v27  ;;  %v1170_v54 = vadd.f32 %v1162_v50, %v1636_v28  ;;  %v1171_v55 = vadd.f32 %v1163_v51, %v1654_v35  ;;  %v1172_v56 = vadd.f32 %v1164_v52, %v1664_v40 }
 0x286   : > { %v1173_v57 = vmax.f32 %v1169_v53, 0.0  ;;  %v1174_v58 = vmax.f32 %v1170_v54, 0.0  ;;  %v1175_v59 = vmax.f32 %v1171_v55, 0.0  ;;  %v1176_v60 = vmax.f32 %v1172_v56, 0.0 }
 0x288   : > { %1177 = vst [vmem:[%s1750_s7] sm:$0xff] %v1173_v57  ;;  %1178 = vst [vmem:[%s1750_s7 + $0x8] sm:$0xff] %v1174_v58 }
 0x289   : > { %1179 = vst [vmem:[%s1750_s7 + $0x10] sm:$0xff] %v1175_v59  ;;  %1180 = vst [vmem:[%s1750_s7 + $0x18] sm:$0xff] %v1176_v60 }
 0x28a PF: > { %s17_s24 = sadd.s32 1, %s1502_s24  }
 0x28b   : > { %p14_p5 = scmp.ge.s32.totalorder %s17_s24, 4  }
 0x28d   :  { %16 = sbr.rel (!%p14_p5) target bundleno = 1 (0x1), region = 93 }

</bundles_post_ra>
